<compile_context>
chip_gen: v7x
topology: tpu7x:2x2x1
jax: 0.10.0
libtpu: 0.0.40
codegen_flags: <defaults>
</compile_context>

<pallas_src>
import functools

import jax
import jax.numpy as jnp
from jax.experimental import pallas as pl
from jax.experimental.pallas import tpu as pltpu


def _linear_relu_kernel(x_ref, w_ref, o_ref, acc_ref):
    """One (TM, TN) output tile, accumulated over the K grid axis.

    x_ref: (TM, TK)   activation tile          (bf16)
    w_ref: (TN, TK)   weight tile, PyTorch (out, in) layout  (bf16)
    o_ref: (TM, TN)   output tile
    acc_ref: (TM, TN) f32 accumulator (persists across the K axis)
    """
    k = pl.program_id(2)

    @pl.when(k == 0)
    def _():
        acc_ref[...] = jnp.zeros_like(acc_ref)

    # y_tile += x_tile @ w_tile.T  — contract last axes of both operands,
    # no transposed materialization inside the kernel.
    acc_ref[...] += jax.lax.dot_general(
        x_ref[...],
        w_ref[...],
        dimension_numbers=(((1,), (1,)), ((), ())),
        preferred_element_type=jnp.float32,
    )

    @pl.when(k == pl.num_programs(2) - 1)
    def _():
        # Fused ReLU on the finalized f32 accumulator.
        o_ref[...] = jnp.maximum(acc_ref[...], 0.0).astype(o_ref.dtype)


@functools.partial(jax.jit, static_argnames=("tm", "tn", "tk"))
def linear_relu_forward(x, weight, *, tm=128, tn=512, tk=512):
    """relu(x @ weight.T); weight is (out_features, in_features) like nn.Linear."""
    T, K = x.shape
    N, K2 = weight.shape
    assert K == K2, "in_features mismatch"

    # Stream operands as bf16 (weight-bandwidth bound); accumulate in f32.
    x_bf16 = x.astype(jnp.bfloat16)
    w_bf16 = weight.astype(jnp.bfloat16)

    # Pad the token dim so TM divides it (K, N = 4096 already divide TK, TN).
    T_pad = pl.cdiv(T, tm) * tm
    if T_pad != T:
        x_bf16 = jnp.pad(x_bf16, ((0, T_pad - T), (0, 0)))

    grid = (T_pad // tm, N // tn, K // tk)

    out = pl.pallas_call(
        _linear_relu_kernel,
        out_shape=jax.ShapeDtypeStruct((T_pad, N), jnp.float32),
        grid_spec=pltpu.PrefetchScalarGridSpec(
            num_scalar_prefetch=0,
            grid=grid,
            in_specs=[
                pl.BlockSpec((tm, tk), lambda i, j, k: (i, k)),  # x tile
                pl.BlockSpec((tn, tk), lambda i, j, k: (j, k)),  # W tile (out, in)
            ],
            out_specs=pl.BlockSpec((tm, tn), lambda i, j, k: (i, j)),
            scratch_shapes=[pltpu.VMEM((tm, tn), jnp.float32)],
        ),
        compiler_params=pltpu.CompilerParams(
            # token & out-feature axes are independent (megacore-shardable);
            # K is a reduction into the resident accumulator.
            dimension_semantics=("parallel", "parallel", "arbitrary"),
            vmem_limit_bytes=64 * 1024 * 1024,
        ),
    )(x_bf16, w_bf16)

    if T_pad != T:
        out = out[:T]
    return out


def linear_relu_reference(x, weight):
    """Pure-JAX reference with the same bf16-in / f32-accumulate numerics."""
    xf = x.astype(jnp.bfloat16).astype(jnp.float32)
    wf = weight.astype(jnp.bfloat16).astype(jnp.float32)
    return jnp.maximum(xf @ wf.T, 0.0)


if __name__ == "__main__":
    # Module fixes in/out features at 4096; keep the batch (token) dim small.
    in_features = 4096
    out_features = 4096
    num_tokens = 128

    key = jax.random.PRNGKey(0)
    k_w, k_x = jax.random.split(key, 2)

    # nn.Linear default init ~ U(-1/sqrt(fan_in), 1/sqrt(fan_in))
    bound = 1.0 / (in_features ** 0.5)
    weight = jax.random.uniform(
        k_w, (out_features, in_features), jnp.float32, minval=-bound, maxval=bound)
    x = jax.random.uniform(
        k_x, (num_tokens, in_features), jnp.float32, minval=-1.0, maxval=1.0)

    out = linear_relu_forward(x, weight)
    out = jax.block_until_ready(out)

    ref = linear_relu_reference(x, weight)
    assert out.shape == (num_tokens, out_features)
    assert jnp.allclose(out, ref, rtol=2e-2, atol=2e-2), "mismatch vs JAX reference"

    print("KERNEL_OK")
</pallas_src>

<mosaic_0001>
module attributes {stable_mosaic.version = 11 : i64} {
  func.func @_linear_relu_kernel(%arg0: i32, %arg1: i32, %arg2: i32, %arg3: memref<128x512xbf16, #tpu.memory_space<vmem>>, %arg4: memref<512x512xbf16, #tpu.memory_space<vmem>>, %arg5: memref<128x512xf32, #tpu.memory_space<vmem>>, %arg6: memref<128x512xf32, #tpu.memory_space<vmem>>) attributes {dimension_semantics = [#tpu.dimension_semantics<parallel>, #tpu.dimension_semantics<parallel>, #tpu.dimension_semantics<arbitrary>], iteration_bounds = array<i64: 1, 8, 8>, scalar_prefetch = 0 : i64, scratch_operands = 1 : i64, tpu.core_type = #tpu.core_type<tc>, window_params = [{transform_indices = @transform_0, window_bounds = array<i64: 128, 512>}, {transform_indices = @transform_1, window_bounds = array<i64: 512, 512>}, {transform_indices = @transform_2, window_bounds = array<i64: 128, 512>}]} {
    %c0_i32 = arith.constant 0 : i32
    %0 = arith.cmpi eq, %arg2, %c0_i32 : i32
    %1 = arith.extui %0 : i1 to i32
    %c0_i32_0 = arith.constant 0 : i32
    %2 = arith.cmpi ne, %1, %c0_i32_0 : i32
    scf.if %2 {
      %cst_9 = arith.constant 0.000000e+00 : f32
      %12 = vector.broadcast %cst_9 : f32 to vector<128x512xf32>
      %c0_10 = arith.constant 0 : index
      %c0_11 = arith.constant 0 : index
      %13 = vector.load %arg6[%c0_10, %c0_11] : memref<128x512xf32, #tpu.memory_space<vmem>>, vector<128x512xf32>
      tpu.vector_store %arg6[%c0_10, %c0_11], %12 {strides = array<i32>} : memref<128x512xf32, #tpu.memory_space<vmem>>, vector<128x512xf32>,
    } else {
    }
    %c0 = arith.constant 0 : index
    %c0_1 = arith.constant 0 : index
    %3 = vector.load %arg6[%c0, %c0_1] : memref<128x512xf32, #tpu.memory_space<vmem>>, vector<128x512xf32>
    %c0_2 = arith.constant 0 : index
    %c0_3 = arith.constant 0 : index
    %4 = vector.load %arg3[%c0_2, %c0_3] : memref<128x512xbf16, #tpu.memory_space<vmem>>, vector<128x512xbf16>
    %c0_4 = arith.constant 0 : index
    %c0_5 = arith.constant 0 : index
    %5 = vector.load %arg4[%c0_4, %c0_5] : memref<512x512xbf16, #tpu.memory_space<vmem>>, vector<512x512xbf16>
    %cst = arith.constant dense<0.000000e+00> : vector<128x512xf32>
    %6 = tpu.matmul %4, %5, %cst {dimension_numbers = #tpu.dot_dimension_numbers<[1], [1], [0], [0], [0, 0, 1, 0], [], []>} : vector<128x512xbf16>, vector<512x512xbf16>, vector<128x512xf32> -> vector<128x512xf32>
    %7 = arith.addf %3, %6 : vector<128x512xf32>
    %c0_6 = arith.constant 0 : index
    %c0_7 = arith.constant 0 : index
    %8 = vector.load %arg6[%c0_6, %c0_7] : memref<128x512xf32, #tpu.memory_space<vmem>>, vector<128x512xf32>
    tpu.vector_store %arg6[%c0_6, %c0_7], %7 {strides = array<i32>} : memref<128x512xf32, #tpu.memory_space<vmem>>, vector<128x512xf32>,
    %c7_i32 = arith.constant 7 : i32
    %9 = arith.cmpi eq, %arg2, %c7_i32 : i32
    %10 = arith.extui %9 : i1 to i32
    %c0_i32_8 = arith.constant 0 : i32
    %11 = arith.cmpi ne, %10, %c0_i32_8 : i32
    scf.if %11 {
      %c0_9 = arith.constant 0 : index
      %c0_10 = arith.constant 0 : index
      %12 = vector.load %arg6[%c0_9, %c0_10] : memref<128x512xf32, #tpu.memory_space<vmem>>, vector<128x512xf32>
      %cst_11 = arith.constant 0.000000e+00 : f32
      %13 = vector.broadcast %cst_11 : f32 to vector<128x512xf32>
      %14 = arith.maximumf %12, %13 : vector<128x512xf32>
      %c0_12 = arith.constant 0 : index
      %c0_13 = arith.constant 0 : index
      %15 = vector.load %arg5[%c0_12, %c0_13] : memref<128x512xf32, #tpu.memory_space<vmem>>, vector<128x512xf32>
      tpu.vector_store %arg5[%c0_12, %c0_13], %14 {strides = array<i32>} : memref<128x512xf32, #tpu.memory_space<vmem>>, vector<128x512xf32>,
    } else {
    }
    return
  }
  func.func @transform_0(%arg0: i32, %arg1: i32, %arg2: i32) -> (i32, i32) {
    %c0_i32 = arith.constant 0 : i32
    return %arg0, %arg2 : i32, i32
  }
  func.func @transform_1(%arg0: i32, %arg1: i32, %arg2: i32) -> (i32, i32) {
    %c0_i32 = arith.constant 0 : i32
    return %arg1, %arg2 : i32, i32
  }
  func.func @transform_2(%arg0: i32, %arg1: i32, %arg2: i32) -> (i32, i32) {
    %c0_i32 = arith.constant 0 : i32
    return %arg0, %arg1 : i32, i32
  }
}

</mosaic_0001>

<bundles_post_ra>
// kernel: linear_relu_forward.1
= control target key start
LH: loop header
LB: loop body
LE: loop exit
PB: predicated region body
PF: predicated region fallthrough
CT: control target
= control target key end

     0   :  { %s3769_s0 = inlined_call_operand.hbm [shape: bf16[128,4096], index: 0, kind: input, shape index: {}]   ;;  %s3770_s1 = inlined_call_operand.hbm [shape: bf16[4096,4096], index: 1, kind: input, shape index: {}]   ;;  %s3771_s2 = inlined_call_operand.hbm [shape: f32[128,4096], index: 2, kind: output, shape index: {}]  }
   0x1   :  { %3785 = sst [smem:[#allocation17_spill]] %s3769_s0 }
   0x2   :  { %3786 = sst [smem:[#allocation18_spill]] %s3771_s2 }
   0x3   :  { %7 = vsyncpa [#allocation4], 0 }
   0x4   :  { %9 = vsyncpa [#allocation4 + $0x1], 0 }
   0x5   :  { %10 = vsyncpa [#allocation7], 0 }
   0x6   :  { %12 = vsyncpa [#allocation7 + $0x1], 0 }
   0x7   :  { %13 = vsyncpa [#allocation5], 0 }
   0x8   :  { %15 = vsyncpa [#allocation5 + $0x1], 0  ;;  %s3108_s9 = smov 0   ;;  %s3110_s10 = smov 0  }
   0x9   :  { %s3112_s11 = smov 0   ;;  %s3114_s12 = smov 0  }
   0xa   :  { %s3116_s13 = smov 0   ;;  %s3118_s14 = smov 0  }
   0xb   :  { %s3120_s15 = smov 0   ;;  %s3122_s16 = smov 0  }
   0xc   :  { %s3124_s17 = smov 0   ;;  %s3126_s18 = smov 0  }
   0xd   :  { %s3128_s19 = smov 0   ;;  %s3130_s20 = smov 0  }
   0xe   :  { %s3132_s21 = smov 0   ;;  %s3134_s22 = smov 0  }
   0xf LB: > { %3787 = sst [smem:[#allocation12_spill]] %s3061_s17  ;;  %s2243_s23 = sadd.s32 4294967295, %s3081_s22   ;;  %s3081_s22 = sphi %s3134_s22, %s21_s22   ;;  %s3077_s21 = sphi %s3132_s21, %s3836_s21   ;;  %s3073_s20 = sphi %s3130_s20, %s3835_s20   ;;  %s3069_s19 = sphi %s3128_s19, %s3834_s19   ;;  %s3065_s18 = sphi %s3126_s18, %s3833_s18   ;;  %s3061_s17 = sphi %s3124_s17, %s3832_s17   ;;  %s3057_s16 = sphi %s3122_s16, %s3831_s16   ;;  %s3053_s15 = sphi %s3120_s15, %s3830_s15   ;;  %s3049_s14 = sphi %s3118_s14, %s3829_s14   ;;  %s3045_s13 = sphi %s3116_s13, %s3828_s13   ;;  %s3041_s12 = sphi %s3114_s12, %s3827_s12   ;;  %s3037_s11 = sphi %s3112_s11, %s3826_s11   ;;  %s3033_s10 = sphi %s3110_s10, %s3825_s10   ;;  %s3029_s9 = sphi %s3108_s9, %s3824_s9  }
  0x10   : > { %s33_s24 = sadd.s32 1, %s3073_s20  ;;  %s49_s26 = sadd.s32 1, %s3061_s17 }
  0x11   : > { %p3178_p0 = scmp.ge.s32.totalorder %s33_s24, 8  ;;  %p56_p1 = scmp.ne.s32.totalorder %s3061_s17, %s3057_s16 }
  0x12   : > { %p3775_p2 = scmp.eq.s32.totalorder %s3081_s22, 0  ;;  %p62_p4 = scmp.ne.s32.totalorder %s3057_s16, %s3053_s15 }
  0x13   : > { %s3838_s24 = smov (%p3178_p0, %s33_s24), 0  ;;  %p3201_p5 = scmp.eq.s32.totalorder %s2243_s23, 0 }
  0x14   : > { %3789 = sst [smem:[#allocation13_spill]] %s3838_s24  ;;  %p3192_p3 = por %p3775_p2, %p56_p1 }
  0x15   : > { %s3199_s28 = ssub.s32 %s3073_s20, %s3838_s24  ;;  %p3206_p7 = scmp.eq.s32.totalorder %s2243_s23, 63 }
  0x16   : > { %s3791_s29 = scalar_select %p3201_p5, 1, 0 }
  0x17   : > { %p47_p6 = scmp.eq.s32.totalorder %s3199_s28, 0  ;;  %p3212_p8 = por %p3201_p5, %p62_p4 }
  0x18   : > { %s3792_s30 = scalar_select %p3206_p7, 1, 0 }
  0x19   : > { %s3793_s3 = scalar_select %p3212_p8, 1, 0 }
  0x1a   : > { %s3217_s4 = scalar_select %p47_p6, %s3061_s17, %s49_s26  }
  0x1b   : > { %p3774_p9 = scmp.lt.s32.totalorder %s3081_s22, 64  ;;  %s142_s5 = sand.u32 1, %s3061_s17  }
  0x1c   : > { %3794 = sst [smem:[#allocation14_spill]] %s3217_s4  ;;  %s2247_s6 = sshll.u32 %s142_s5, 8 }
  0x1d   : > { %s2426_s7 = sshll.u32 %s3073_s20, 8  ;;  %s3795_s0 = sld [smem:[#allocation17_spill]] }
  0x1e   : > { %s146_s23 = scalar_lea.vmem [#allocation3], %s2247_s6  ;;  %p3233_p10 = pnand %p3774_p9, %p3192_p3 }
  0x1f   : > { %s156_s2 = sshll.u32 %s146_s23, 4  ;;  %s3237_s4 = scalar_lea.sflag [#allocation4], %s142_s5  ;;  %s3227_s2 = int_to_ptr.vmem [resolvable:$true] %s156_s2 }
  0x20   : > { %p2873_p12 = pneg %p3233_p10 }
  0x23   : > { %s3225_s24 = scalar_lea.hbm %s3795_s0, %s2426_s7  ;;  %s2876_s27 = scalar_lea.hbm %s3795_s0, 32768 }
  0x24   : > { %s2871_s7 = scalar_lea.hbm %s3225_s24, 4096  ;;  %p2877_p3 = scmp.lt.u32.totalorder %s3225_s24, %s3795_s0 }
  0x25   : > { %p2872_p11 = scmp.ne.s32.totalorder %s3225_s24, %s2871_s7  ;;  %p2878_p4 = scmp.lt.u32.totalorder %s2876_s27, %s2871_s7 }
  0x26   : > { %p2880_p9 = scmp.lt.u32.totalorder %s2871_s7, %s3225_s24 }
  0x27   : > { %p2874_p13 = pnand %p2873_p12, %p2872_p11  ;;  %p2879_p6 = por %p2878_p4, %p2877_p3 }
  0x29   : > { %p2875_p1 = pneg %p2874_p13  ;;  %p2881_p2 = por %p2880_p9, %p2879_p6 }
  0x2b   : > { %p2882_p8 = pnand %p2881_p2, %p2875_p1 }
  0x2d   : > { %2885 = shalt.err (!%p2882_p8)
}
  0x2e   : > { %s2886_s5 = scalar_lea.vmem %s3227_s2, 4096  ;;  %s3083_s6 = smov [#allocation3]  }
  0x2f   : > { %p2887_p11 = scmp.ne.s32.totalorder %s3227_s2, %s2886_s5  ;;  %s2891_s8 = sshll.u32 %s3083_s6, 4  ;;  %s2892_s8 = int_to_ptr.vmem [resolvable:$false] %s2891_s8 }
  0x30   : > { %s2893_s15 = scalar_lea.vmem %s2892_s8, 8192  ;;  %p2894_p5 = scmp.lt.s32.totalorder %s3227_s2, %s2892_s8 }
  0x31   : > { %p2889_p13 = pnand %p2887_p11, %p2873_p12  ;;  %p2895_p3 = scmp.lt.s32.totalorder %s2893_s15, %s2886_s5 }
  0x33   : > { %p2890_p7 = pneg %p2889_p13  ;;  %p2896_p4 = por %p2895_p3, %p2894_p5 }
  0x35   : > { %p2897_p9 = pnand %p2896_p4, %p2890_p7 }
  0x37   : > { %2900 = shalt.err (!%p2897_p9)
}
  0x38   : > { %s3778_s7 = smov 2048   ;;  %s3779_s27 = smov 256  }
  0x39   : > { %s3780_s23 = smov 16   ;;  %p2255_p2 = scmp.ge.s32.totalorder %s3081_s22, 1 }
  0x3a   : > { %2502 = dma.hbm_to_vmem [thread:$0]  (!%p3233_p10), %s3225_s24, 4096, %s3227_s2, %s3237_s4, %s3778_s7, %s3779_s27, %s3780_s23  }
  0x3b   : > { %p188_p5 = scmp.lt.s32.totalorder %s3081_s22, 65  ;;  %s2244_s6 = sadd.s32 4294967294, %s3081_s22  }
  0x3c   : > { %s36_s8 = sadd.s32 1, %s3077_s21  ;;  %s77_s15 = sadd.s32 1, %s3049_s14 }
  0x3d   : > { %p3270_p7 = pnand %p2255_p2, %p188_p5  ;;  %s3840_s8 = smov (!%p3178_p0, %s36_s8), %s3077_s21 }
  0x3e   : > { %p84_p8 = scmp.ne.s32.totalorder %s3049_s14, %s3045_s13  ;;  %p90_p10 = scmp.ne.s32.totalorder %s3045_s13, %s3041_s12 }
  0x3f   : > { %p38_p12 = scmp.ge.s32.totalorder %s3840_s8, 8  ;;  %s105_s2 = sadd.s32 1, %s3037_s11 }
  0x40   : > { %p3798_p1 = scmp.eq.s32.totalorder %s3081_s22, 0  ;;  %p3800_p11 = scmp.ne.s32.totalorder %s3791_s29, 0 }
  0x41   : > { %s3842_s8 = smov (%p38_p12, %s3840_s8), 0  ;;  %p115_p0 = scmp.ne.s32.totalorder %s3037_s11, %s3033_s10 }
  0x42   : > { %p3287_p6 = por %p84_p8, %p3798_p1  ;;  %p3293_p13 = por %p90_p10, %p3800_p11 }
  0x43   : > { %3802 = sst [smem:[#allocation15_spill]] %s3842_s8  ;;  %p121_p3 = scmp.ne.s32.totalorder %s3033_s10, %s3029_s9 }
  0x44   : > { %s3801_s4 = scalar_select %p3293_p13, 1, 0 }
  0x45   : > { %s72_s12 = ssub.s32 %s3077_s21, %s3842_s8  ;;  %p122_p4 = scmp.eq.s32.totalorder %s2244_s6, 63 }
  0x46   : > { %s74_s25 = sor.u32 %s72_s12, %s3199_s28  ;;  %p103_p9 = scmp.eq.s32.totalorder %s72_s12, 0 }
  0x47   : > { %p75_p2 = scmp.eq.s32.totalorder %s74_s25, 0  ;;  %p3803_p5 = scmp.ne.s32.totalorder %s3792_s30, 0 }
  0x48   : > { %s3313_s26 = scalar_select %p103_p9, %s3037_s11, %s105_s2  }
  0x49   : > { %p3308_p8 = por %p3803_p5, %p115_p0  ;;  %p3318_p10 = por %p122_p4, %p121_p3 }
  0x4a   : > { %s3316_s7 = scalar_select %p75_p2, %s3049_s14, %s77_s15  }
  0x4b   : > { %s3804_s29 = scalar_select %p3308_p8, 1, 0 }
  0x4c   : > { %3805 = sst [smem:[#allocation16_spill]] %s3316_s7  ;;  %s166_s23 = sand.u32 1, %s3049_s14  }
  0x4d   : > { %s3806_s27 = scalar_select %p3318_p10, 1, 0 }
  0x4e   : > { %s2250_s6 = sshll.u32 %s166_s23, 10  ;;  %s2252_s28 = sshll.u32 %s3073_s20, 2 }
  0x4f   : > { %s2427_s0 = sshll.u32 %s3077_s21, 11  ;;  %s170_s8 = scalar_lea.vmem [#allocation6], %s2250_s6 }
  0x50   : > { %s180_s12 = sshll.u32 %s170_s8, 4  ;;  %s177_s25 = sadd.s32 %s2427_s0, %s2252_s28  ;;  %s3325_s12 = int_to_ptr.vmem [resolvable:$true] %s180_s12 }
  0x51   : > { %s2254_s30 = sshll.u32 %s177_s25, 6  ;;  %p3807_p12 = scmp.lt.s32.totalorder %s3081_s22, 64 }
  0x52   : > { %s3338_s7 = scalar_lea.hbm %s3770_s1, %s2254_s30  ;;  %s3340_s0 = scalar_lea.sflag [#allocation7], %s166_s23 }
  0x53   : > { %p3331_p1 = pnand %p3807_p12, %p3287_p6  ;;  %s2901_s8 = scalar_lea.hbm %s3338_s7, 16384 }
  0x54   : > { %p2902_p11 = scmp.ne.s32.totalorder %s3338_s7, %s2901_s8  ;;  %s2906_s6 = scalar_lea.hbm %s3770_s1, 1048576 }
  0x55   : > { %p2903_p6 = pneg %p3331_p1  ;;  %p2907_p4 = scmp.lt.u32.totalorder %s3338_s7, %s3770_s1 }
  0x56   : > { %p2908_p9 = scmp.lt.u32.totalorder %s2906_s6, %s2901_s8  ;;  %p2910_p5 = scmp.lt.u32.totalorder %s2901_s8, %s3338_s7 }
  0x57   : > { %p2904_p0 = pnand %p2903_p6, %p2902_p11 }
  0x58   : > { %p2909_p2 = por %p2908_p9, %p2907_p4 }
  0x59   : > { %p2905_p3 = pneg %p2904_p0 }
  0x5a   : > { %p2911_p12 = por %p2910_p5, %p2909_p2 }
  0x5c   : > { %p2912_p10 = pnand %p2911_p12, %p2905_p3 }
  0x5e   : > { %2915 = shalt.err (!%p2912_p10)
}
  0x5f   : > { %s2916_s23 = scalar_lea.vmem %s3325_s12, 16384  ;;  %s3087_s30 = smov [#allocation6]  }
  0x60   : > { %p2917_p11 = scmp.ne.s32.totalorder %s3325_s12, %s2916_s23  ;;  %s2921_s15 = sshll.u32 %s3087_s30, 4  ;;  %s2922_s15 = int_to_ptr.vmem [resolvable:$false] %s2921_s15 }
  0x61   : > { %s2923_s24 = scalar_lea.vmem %s2922_s15, 32768  ;;  %p2924_p13 = scmp.lt.s32.totalorder %s3325_s12, %s2922_s15 }
  0x62   : > { %p2919_p0 = pnand %p2917_p11, %p2903_p6  ;;  %p2925_p4 = scmp.lt.s32.totalorder %s2923_s24, %s2916_s23 }
  0x64   : > { %p2920_p8 = pneg %p2919_p0  ;;  %p2926_p9 = por %p2925_p4, %p2924_p13 }
  0x66   : > { %p2927_p2 = pnand %p2926_p9, %p2920_p8 }
  0x68   : > { %2930 = shalt.err (!%p2927_p2)
}
  0x69   : > { %s3809_s8 = smov 16   ;;  %s3810_s17 = smov 256  }
  0x6a   : > { %s3811_s6 = smov 2048   ;;  %192 = sbr.rel (%p3270_p7) target bundleno = 737 (0x2e1), region = 28 }
  0x6b   : > { %2505 = dma.hbm_to_vmem [thread:$0]  (!%p3331_p1), %s3338_s7, 16384, %s3325_s12, %s3340_s0, %s3811_s6, %s3810_s17, %s3809_s8  }
  0x6c   : > { %s194_s28 = sand.u32 (!%p3270_p7), 1, %s3057_s16   ;;  %p3812_p13 = scmp.ne.s32.totalorder (!%p3270_p7), %s3793_s3, 0 }
  0x6d   : > { %s2256_s25 = sshll.u32 (!%p3270_p7), %s194_s28, 8  ;;  %s195_s23 = scalar_lea.sflag (!%p3270_p7), [#allocation4], %s194_s28 }
  0x6e   : > { %s3374_s30 = scalar_lea.vmem (!%p3270_p7), [#allocation3], %s2256_s25 }
  0x71   : > { %3016 = dma.done.wait (%p3812_p13), %s195_s23, 4096  }
  0x72   : > { %3018 = vsyncadd (%p3812_p13), %s195_s23, 4294963200  ;;  %s203_s2 = sand.u32 1, %s3045_s13   ;;  %p3813_p7 = scmp.ne.s32.totalorder %s3801_s4, 0 }
  0x73   : > { %s2257_s15 = sshll.u32 %s203_s2, 10  ;;  %s204_s7 = scalar_lea.sflag [#allocation7], %s203_s2 }
  0x74   : > { %s3381_s12 = scalar_lea.vmem [#allocation6], %s2257_s15 }
  0x75   : > { %3020 = dma.done.wait (%p3813_p7), %s204_s7, 16384  }
  0x76   : > { %3022 = vsyncadd (%p3813_p7), %s204_s7, 4294950912  ;;  %s230_s5 = sand.u32 1, %s3033_s10   ;;  %p2259_p8 = scmp.ne.s32.totalorder %s3065_s18, 0 }
  0x77   : > { %s2258_s0 = sshll.u32 %s230_s5, 9  ;;  %v3088_v0 = vmov (!%p2259_p8), 0.0  }
  0x78   : > { %s3390_s24 = scalar_lea.vmem [#allocation8], %s2258_s0  ;;  %242 = sbr.rel (%p2259_p8) target bundleno = 152 (0x98), region = 40  ;;  %243 = vst [vmem:[#allocation2] sm:$0xff] (!%p2259_p8), %v3088_v0  ;;  %244 = vst [vmem:[#allocation2 + $0x8] sm:$0xff] (!%p2259_p8), %v3088_v0 }
  0x79   : > { %245 = vst [vmem:[#allocation2 + $0x10] sm:$0xff] (!%p2259_p8), %v3088_v0  ;;  %246 = vst [vmem:[#allocation2 + $0x18] sm:$0xff] (!%p2259_p8), %v3088_v0 }
  0x7a   : > { %247 = vst [vmem:[#allocation2 + $0x20] sm:$0xff] (!%p2259_p8), %v3088_v0  ;;  %248 = vst [vmem:[#allocation2 + $0x28] sm:$0xff] (!%p2259_p8), %v3088_v0 }
  0x7b   : > { %249 = vst [vmem:[#allocation2 + $0x30] sm:$0xff] (!%p2259_p8), %v3088_v0  ;;  %250 = vst [vmem:[#allocation2 + $0x38] sm:$0xff] (!%p2259_p8), %v3088_v0 }
  0x7c   : > { %251 = vst [vmem:[#allocation2 + $0x40] sm:$0xff] (!%p2259_p8), %v3088_v0  ;;  %252 = vst [vmem:[#allocation2 + $0x48] sm:$0xff] (!%p2259_p8), %v3088_v0 }
  0x7d   : > { %253 = vst [vmem:[#allocation2 + $0x50] sm:$0xff] (!%p2259_p8), %v3088_v0  ;;  %254 = vst [vmem:[#allocation2 + $0x58] sm:$0xff] (!%p2259_p8), %v3088_v0 }
  0x7e   : > { %255 = vst [vmem:[#allocation2 + $0x60] sm:$0xff] (!%p2259_p8), %v3088_v0  ;;  %256 = vst [vmem:[#allocation2 + $0x68] sm:$0xff] (!%p2259_p8), %v3088_v0 }
  0x7f   : > { %257 = vst [vmem:[#allocation2 + $0x70] sm:$0xff] %v3088_v0  ;;  %258 = vst [vmem:[#allocation2 + $0x78] sm:$0xff] %v3088_v0 }
  0x80   : > { %259 = vst [vmem:[#allocation2 + $0x80] sm:$0xff] %v3088_v0  ;;  %260 = vst [vmem:[#allocation2 + $0x88] sm:$0xff] %v3088_v0 }
  0x81   : > { %261 = vst [vmem:[#allocation2 + $0x90] sm:$0xff] %v3088_v0  ;;  %262 = vst [vmem:[#allocation2 + $0x98] sm:$0xff] %v3088_v0 }
  0x82   : > { %263 = vst [vmem:[#allocation2 + $0xa0] sm:$0xff] %v3088_v0  ;;  %264 = vst [vmem:[#allocation2 + $0xa8] sm:$0xff] %v3088_v0 }
  0x83   : > { %265 = vst [vmem:[#allocation2 + $0xb0] sm:$0xff] %v3088_v0  ;;  %266 = vst [vmem:[#allocation2 + $0xb8] sm:$0xff] %v3088_v0 }
  0x84   : > { %267 = vst [vmem:[#allocation2 + $0xc0] sm:$0xff] %v3088_v0  ;;  %268 = vst [vmem:[#allocation2 + $0xc8] sm:$0xff] %v3088_v0 }
  0x85   : > { %269 = vst [vmem:[#allocation2 + $0xd0] sm:$0xff] %v3088_v0  ;;  %270 = vst [vmem:[#allocation2 + $0xd8] sm:$0xff] %v3088_v0 }
  0x86   : > { %271 = vst [vmem:[#allocation2 + $0xe0] sm:$0xff] %v3088_v0  ;;  %272 = vst [vmem:[#allocation2 + $0xe8] sm:$0xff] %v3088_v0 }
  0x87   : > { %273 = vst [vmem:[#allocation2 + $0xf0] sm:$0xff] %v3088_v0  ;;  %274 = vst [vmem:[#allocation2 + $0xf8] sm:$0xff] %v3088_v0 }
  0x88   : > { %275 = vst [vmem:[#allocation2 + $0x100] sm:$0xff] %v3088_v0  ;;  %276 = vst [vmem:[#allocation2 + $0x108] sm:$0xff] %v3088_v0 }
  0x89   : > { %277 = vst [vmem:[#allocation2 + $0x110] sm:$0xff] %v3088_v0  ;;  %278 = vst [vmem:[#allocation2 + $0x118] sm:$0xff] %v3088_v0 }
  0x8a   : > { %279 = vst [vmem:[#allocation2 + $0x120] sm:$0xff] %v3088_v0  ;;  %280 = vst [vmem:[#allocation2 + $0x128] sm:$0xff] %v3088_v0 }
  0x8b   : > { %281 = vst [vmem:[#allocation2 + $0x130] sm:$0xff] %v3088_v0  ;;  %282 = vst [vmem:[#allocation2 + $0x138] sm:$0xff] %v3088_v0 }
  0x8c   : > { %283 = vst [vmem:[#allocation2 + $0x140] sm:$0xff] %v3088_v0  ;;  %284 = vst [vmem:[#allocation2 + $0x148] sm:$0xff] %v3088_v0 }
  0x8d   : > { %285 = vst [vmem:[#allocation2 + $0x150] sm:$0xff] %v3088_v0  ;;  %286 = vst [vmem:[#allocation2 + $0x158] sm:$0xff] %v3088_v0 }
  0x8e   : > { %287 = vst [vmem:[#allocation2 + $0x160] sm:$0xff] %v3088_v0  ;;  %288 = vst [vmem:[#allocation2 + $0x168] sm:$0xff] %v3088_v0 }
  0x8f   : > { %289 = vst [vmem:[#allocation2 + $0x170] sm:$0xff] %v3088_v0  ;;  %290 = vst [vmem:[#allocation2 + $0x178] sm:$0xff] %v3088_v0 }
  0x90   : > { %291 = vst [vmem:[#allocation2 + $0x180] sm:$0xff] %v3088_v0  ;;  %292 = vst [vmem:[#allocation2 + $0x188] sm:$0xff] %v3088_v0 }
  0x91   : > { %293 = vst [vmem:[#allocation2 + $0x190] sm:$0xff] %v3088_v0  ;;  %294 = vst [vmem:[#allocation2 + $0x198] sm:$0xff] %v3088_v0 }
  0x92   : > { %295 = vst [vmem:[#allocation2 + $0x1a0] sm:$0xff] %v3088_v0  ;;  %296 = vst [vmem:[#allocation2 + $0x1a8] sm:$0xff] %v3088_v0 }
  0x93   : > { %297 = vst [vmem:[#allocation2 + $0x1b0] sm:$0xff] %v3088_v0  ;;  %298 = vst [vmem:[#allocation2 + $0x1b8] sm:$0xff] %v3088_v0 }
  0x94   : > { %299 = vst [vmem:[#allocation2 + $0x1c0] sm:$0xff] %v3088_v0  ;;  %300 = vst [vmem:[#allocation2 + $0x1c8] sm:$0xff] %v3088_v0 }
  0x95   : > { %301 = vst [vmem:[#allocation2 + $0x1d0] sm:$0xff] %v3088_v0  ;;  %302 = vst [vmem:[#allocation2 + $0x1d8] sm:$0xff] %v3088_v0 }
  0x96   : > { %303 = vst [vmem:[#allocation2 + $0x1e0] sm:$0xff] %v3088_v0  ;;  %304 = vst [vmem:[#allocation2 + $0x1e8] sm:$0xff] %v3088_v0 }
  0x97   : > { %305 = vst [vmem:[#allocation2 + $0x1f0] sm:$0xff] %v3088_v0  ;;  %306 = vst [vmem:[#allocation2 + $0x1f8] sm:$0xff] %v3088_v0 }
  0x98 PF: > { %v2631_v1 = vld [vmem:[%s3381_s12 + $0x4] ss:$16 sps:$4 sm:$0xff]   ;;  %v2635_v3 = vld [vmem:[%s3381_s12] ss:$16 sps:$4 sm:$0xff]   ;;  %p2420_p10 = scmp.ne.s32.totalorder %s3065_s18, 7 }
  0x99   : > { %v2633_v2 = vld [vmem:[%s3381_s12 + $0x204] ss:$16 sps:$4 sm:$0xff]   ;;  %1331 = vmatprep.subr.bf16.mxu0 %v2631_v1  ;;  %v2636_v4 = vld [vmem:[%s3381_s12 + $0x200] ss:$16 sps:$4 sm:$0xff]  }
  0x9a   : > { %1557 = vmatprep.subr.bf16.mxu1 %v2633_v2  ;;  %v2637_v5 = vld [vmem:[%s3381_s12 + $0x24] ss:$16 sps:$4 sm:$0xff]   ;;  %1332 = vmatpush1.bf16.xpose.msra.mxu0 %v2635_v3  ;;  %v2641_v7 = vld [vmem:[%s3381_s12 + $0x20] ss:$16 sps:$4 sm:$0xff]   ;;  %v2732_v2 = vld [vmem:[%s3381_s12 + $0xc] ss:$16 sps:$4 sm:$0xff]  }
  0x9b   : > { %1558 = vmatpush1.bf16.xpose.msra.mxu1 %v2636_v4  ;;  %v2639_v6 = vld [vmem:[%s3381_s12 + $0x224] ss:$16 sps:$4 sm:$0xff]   ;;  %1333 = vmatprep.subr.bf16.mxu0 %v2637_v5  ;;  %v2642_v8 = vld [vmem:[%s3381_s12 + $0x220] ss:$16 sps:$4 sm:$0xff]   ;;  %v2735_v3 = vld [vmem:[%s3381_s12 + $0x20c] ss:$16 sps:$4 sm:$0xff]  }
  0x9c   : > { %1559 = vmatprep.subr.bf16.mxu1 %v2639_v6  ;;  %v2643_v9 = vld [vmem:[%s3381_s12 + $0x44] ss:$16 sps:$4 sm:$0xff]   ;;  %v2647_v11 = vld [vmem:[%s3381_s12 + $0x40] ss:$16 sps:$4 sm:$0xff]   ;;  %v2730_v5 = vld [vmem:[%s3381_s12 + $0x8] ss:$16 sps:$4 sm:$0xff]  }
  0x9d   : > { %v2645_v10 = vld [vmem:[%s3381_s12 + $0x244] ss:$16 sps:$4 sm:$0xff]   ;;  %v2648_v12 = vld [vmem:[%s3381_s12 + $0x240] ss:$16 sps:$4 sm:$0xff]   ;;  %v2733_v6 = vld [vmem:[%s3381_s12 + $0x208] ss:$16 sps:$4 sm:$0xff]  }
  0x9e   : > { %v2649_v13 = vld [vmem:[%s3381_s12 + $0x64] ss:$16 sps:$4 sm:$0xff]   ;;  %v2653_v15 = vld [vmem:[%s3381_s12 + $0x60] ss:$16 sps:$4 sm:$0xff]  }
  0x9f   : > { %v2651_v14 = vld [vmem:[%s3381_s12 + $0x264] ss:$16 sps:$4 sm:$0xff]   ;;  %v2654_v16 = vld [vmem:[%s3381_s12 + $0x260] ss:$16 sps:$4 sm:$0xff]  }
  0xa0   : > { %v2655_v17 = vld [vmem:[%s3381_s12 + $0x84] ss:$16 sps:$4 sm:$0xff]   ;;  %v2659_v19 = vld [vmem:[%s3381_s12 + $0x80] ss:$16 sps:$4 sm:$0xff]  }
  0xa1   : > { %v2657_v18 = vld [vmem:[%s3381_s12 + $0x284] ss:$16 sps:$4 sm:$0xff]   ;;  %v2660_v20 = vld [vmem:[%s3381_s12 + $0x280] ss:$16 sps:$4 sm:$0xff]  }
  0xa2   : > { %1334 = vmatpush1.bf16.xpose.msra.mxu0 %v2641_v7  ;;  %v2661_v21 = vld [vmem:[%s3381_s12 + $0xa4] ss:$16 sps:$4 sm:$0xff]   ;;  %v2665_v23 = vld [vmem:[%s3381_s12 + $0xa0] ss:$16 sps:$4 sm:$0xff]   ;;  %v2738_v7 = vld [vmem:[%s3381_s12 + $0x2c] ss:$16 sps:$4 sm:$0xff]  }
  0xa3   : > { %1560 = vmatpush1.bf16.xpose.msra.mxu1 %v2642_v8  ;;  %1335 = vmatprep.subr.bf16.mxu0 %v2643_v9  ;;  %v2663_v22 = vld [vmem:[%s3381_s12 + $0x2a4] ss:$16 sps:$4 sm:$0xff]   ;;  %v2666_v24 = vld [vmem:[%s3381_s12 + $0x2a0] ss:$16 sps:$4 sm:$0xff]   ;;  %v2741_v8 = vld [vmem:[%s3381_s12 + $0x22c] ss:$16 sps:$4 sm:$0xff]  }
  0xa4   : > { %1561 = vmatprep.subr.bf16.mxu1 %v2645_v10  ;;  %v2667_v25 = vld [vmem:[%s3381_s12 + $0xc4] ss:$16 sps:$4 sm:$0xff]   ;;  %v2671_v28 = vld [vmem:[%s3381_s12 + $0xc0] ss:$16 sps:$4 sm:$0xff]  }
  0xa5   : > { %v2669_v26 = vld [vmem:[%s3381_s12 + $0x2c4] ss:$16 sps:$4 sm:$0xff]   ;;  %v2672_v29 = vld [vmem:[%s3381_s12 + $0x2c0] ss:$16 sps:$4 sm:$0xff]  }
  0xa6   : > { %v2729_v27 = vld [vmem:[%s3374_s30 + $0x4] ss:$16 sps:$4 sm:$0xff]   ;;  %v2677_v32 = vld [vmem:[%s3381_s12 + $0xe0] ss:$16 sps:$4 sm:$0xff]  }
  0xa7   : > { %1363 = vmatprep.mubr.bf16.mxu0 %v2729_v27  ;;  %1589 = vmatprep.mubr.bf16.mxu1 %v2729_v27  ;;  %v2673_v30 = vld [vmem:[%s3381_s12 + $0xe4] ss:$16 sps:$4 sm:$0xff]   ;;  %v2678_v33 = vld [vmem:[%s3381_s12 + $0x2e0] ss:$16 sps:$4 sm:$0xff]  }
  0xa8   : > { %v2675_v31 = vld [vmem:[%s3381_s12 + $0x2e4] ss:$16 sps:$4 sm:$0xff]   ;;  %v2683_v36 = vld [vmem:[%s3381_s12 + $0x100] ss:$16 sps:$4 sm:$0xff]  }
  0xa9   : > { %v2679_v34 = vld [vmem:[%s3381_s12 + $0x104] ss:$16 sps:$4 sm:$0xff]   ;;  %v2684_v37 = vld [vmem:[%s3381_s12 + $0x300] ss:$16 sps:$4 sm:$0xff]  }
  0xaa   : > { %1336 = vmatpush1.bf16.xpose.msra.mxu0 %v2647_v11  ;;  %v2681_v35 = vld [vmem:[%s3381_s12 + $0x304] ss:$16 sps:$4 sm:$0xff]   ;;  %v2689_v40 = vld [vmem:[%s3381_s12 + $0x120] ss:$16 sps:$4 sm:$0xff]   ;;  %v2736_v11 = vld [vmem:[%s3381_s12 + $0x28] ss:$16 sps:$4 sm:$0xff]  }
  0xab   : > { %1562 = vmatpush1.bf16.xpose.msra.mxu1 %v2648_v12  ;;  %1337 = vmatprep.subr.bf16.mxu0 %v2649_v13  ;;  %v2685_v38 = vld [vmem:[%s3381_s12 + $0x124] ss:$16 sps:$4 sm:$0xff]   ;;  %v2690_v41 = vld [vmem:[%s3381_s12 + $0x320] ss:$16 sps:$4 sm:$0xff]   ;;  %v2739_v12 = vld [vmem:[%s3381_s12 + $0x228] ss:$16 sps:$4 sm:$0xff]  }
  0xac   : > { %1563 = vmatprep.subr.bf16.mxu1 %v2651_v14  ;;  %v2687_v39 = vld [vmem:[%s3381_s12 + $0x324] ss:$16 sps:$4 sm:$0xff]   ;;  %v2695_v44 = vld [vmem:[%s3381_s12 + $0x140] ss:$16 sps:$4 sm:$0xff]   ;;  %v2744_v13 = vld [vmem:[%s3381_s12 + $0x4c] ss:$16 sps:$4 sm:$0xff]  }
  0xad   : > { %v2691_v42 = vld [vmem:[%s3381_s12 + $0x144] ss:$16 sps:$4 sm:$0xff]   ;;  %v2696_v45 = vld [vmem:[%s3381_s12 + $0x340] ss:$16 sps:$4 sm:$0xff]   ;;  %v2747_v14 = vld [vmem:[%s3381_s12 + $0x24c] ss:$16 sps:$4 sm:$0xff]  }
  0xae   : > { %v2693_v43 = vld [vmem:[%s3381_s12 + $0x344] ss:$16 sps:$4 sm:$0xff]   ;;  %v2701_v48 = vld [vmem:[%s3381_s12 + $0x160] ss:$16 sps:$4 sm:$0xff]  }
  0xaf   : > { %v2697_v46 = vld [vmem:[%s3381_s12 + $0x164] ss:$16 sps:$4 sm:$0xff]   ;;  %v2702_v49 = vld [vmem:[%s3381_s12 + $0x360] ss:$16 sps:$4 sm:$0xff]  }
  0xb0   : > { %v2699_v47 = vld [vmem:[%s3381_s12 + $0x364] ss:$16 sps:$4 sm:$0xff]   ;;  %v2707_v52 = vld [vmem:[%s3381_s12 + $0x180] ss:$16 sps:$4 sm:$0xff]  }
  0xb1   : > { %v2703_v50 = vld [vmem:[%s3381_s12 + $0x184] ss:$16 sps:$4 sm:$0xff]   ;;  %v2708_v53 = vld [vmem:[%s3381_s12 + $0x380] ss:$16 sps:$4 sm:$0xff]  }
  0xb2   : > { %1338 = vmatpush1.bf16.xpose.msra.mxu0 %v2653_v15  ;;  %v2705_v51 = vld [vmem:[%s3381_s12 + $0x384] ss:$16 sps:$4 sm:$0xff]   ;;  %v2713_v56 = vld [vmem:[%s3381_s12 + $0x1a0] ss:$16 sps:$4 sm:$0xff]  }
  0xb3   : > { %1564 = vmatpush1.bf16.xpose.msra.mxu1 %v2654_v16  ;;  %1339 = vmatprep.subr.bf16.mxu0 %v2655_v17  ;;  %v2709_v54 = vld [vmem:[%s3381_s12 + $0x1a4] ss:$16 sps:$4 sm:$0xff]   ;;  %v2714_v57 = vld [vmem:[%s3381_s12 + $0x3a0] ss:$16 sps:$4 sm:$0xff]   ;;  %v2742_v17 = vld [vmem:[%s3381_s12 + $0x48] ss:$16 sps:$4 sm:$0xff]  }
  0xb4   : > { %1565 = vmatprep.subr.bf16.mxu1 %v2657_v18  ;;  %v2711_v55 = vld [vmem:[%s3381_s12 + $0x3a4] ss:$16 sps:$4 sm:$0xff]   ;;  %v2719_v60 = vld [vmem:[%s3381_s12 + $0x1c0] ss:$16 sps:$4 sm:$0xff]   ;;  %v2745_v18 = vld [vmem:[%s3381_s12 + $0x248] ss:$16 sps:$4 sm:$0xff]  }
  0xb5   : > { %v2715_v58 = vld [vmem:[%s3381_s12 + $0x1c4] ss:$16 sps:$4 sm:$0xff]   ;;  %v2720_v61 = vld [vmem:[%s3381_s12 + $0x3c0] ss:$16 sps:$4 sm:$0xff]  }
  0xb6   : > { %v2717_v59 = vld [vmem:[%s3381_s12 + $0x3c4] ss:$16 sps:$4 sm:$0xff]   ;;  %v2725_v0 = vld [vmem:[%s3381_s12 + $0x1e0] ss:$16 sps:$4 sm:$0xff]  }
  0xb7   : > { %v2721_v62 = vld [vmem:[%s3381_s12 + $0x1e4] ss:$16 sps:$4 sm:$0xff]   ;;  %v2726_v1 = vld [vmem:[%s3381_s12 + $0x3e0] ss:$16 sps:$4 sm:$0xff]  }
  0xb8   : > { %v2723_v63 = vld [vmem:[%s3381_s12 + $0x3e4] ss:$16 sps:$4 sm:$0xff]   ;;  %v2727_v4 = vld [vmem:[%s3374_s30] ss:$16 sps:$4 sm:$0xff]  }
  0xb9   : > { %v2784_v9 = vld [vmem:[%s3374_s30 + $0x24] ss:$16 sps:$4 sm:$0xff]   ;;  %v2786_v10 = vld [vmem:[%s3374_s30 + $0x20] ss:$16 sps:$4 sm:$0xff]  }
  0xba   : > { %1340 = vmatpush1.bf16.xpose.msra.mxu0 %v2659_v19  ;;  %v2793_v15 = vld [vmem:[%s3374_s30 + $0x44] ss:$16 sps:$4 sm:$0xff]   ;;  %v2795_v16 = vld [vmem:[%s3374_s30 + $0x40] ss:$16 sps:$4 sm:$0xff]   ;;  %v2750_v19 = vld [vmem:[%s3381_s12 + $0x6c] ss:$16 sps:$4 sm:$0xff]  }
  0xbb   : > { %1566 = vmatpush1.bf16.xpose.msra.mxu1 %v2660_v20  ;;  %1341 = vmatprep.subr.bf16.mxu0 %v2661_v21  ;;  %v2753_v20 = vld [vmem:[%s3381_s12 + $0x26c] ss:$16 sps:$4 sm:$0xff]   ;;  %v2802_v21 = vld [vmem:[%s3374_s30 + $0x64] ss:$16 sps:$4 sm:$0xff]  }
  0xbc   : > { %1567 = vmatprep.subr.bf16.mxu1 %v2663_v22  ;;  %v2804_v22 = vld [vmem:[%s3374_s30 + $0x60] ss:$16 sps:$4 sm:$0xff]   ;;  %v2811_v27 = vld [vmem:[%s3374_s30 + $0x84] ss:$16 sps:$4 sm:$0xff]  }
  0xc2   : > { %1342 = vmatpush1.bf16.xpose.msra.mxu0 %v2665_v23  ;;  %v2748_v23 = vld [vmem:[%s3381_s12 + $0x68] ss:$16 sps:$4 sm:$0xff]  }
  0xc3   : > { %1568 = vmatpush1.bf16.xpose.msra.mxu1 %v2666_v24  ;;  %1343 = vmatprep.subr.bf16.mxu0 %v2667_v25  ;;  %v2751_v24 = vld [vmem:[%s3381_s12 + $0x268] ss:$16 sps:$4 sm:$0xff]   ;;  %v2756_v25 = vld [vmem:[%s3381_s12 + $0x8c] ss:$16 sps:$4 sm:$0xff]  }
  0xc4   : > { %1569 = vmatprep.subr.bf16.mxu1 %v2669_v26  ;;  %v2759_v26 = vld [vmem:[%s3381_s12 + $0x28c] ss:$16 sps:$4 sm:$0xff]  }
  0xca   : > { %1344 = vmatpush1.bf16.xpose.msra.mxu0 %v2671_v28  ;;  %v2813_v28 = vld [vmem:[%s3374_s30 + $0x80] ss:$16 sps:$4 sm:$0xff]  }
  0xcb   : > { %1570 = vmatpush1.bf16.xpose.msra.mxu1 %v2672_v29  ;;  %1345 = vmatprep.subr.bf16.mxu0 %v2673_v30  ;;  %v2754_v29 = vld [vmem:[%s3381_s12 + $0x88] ss:$16 sps:$4 sm:$0xff]  }
  0xcc   : > { %1571 = vmatprep.subr.bf16.mxu1 %v2675_v31  ;;  %v2757_v30 = vld [vmem:[%s3381_s12 + $0x288] ss:$16 sps:$4 sm:$0xff]   ;;  %v2762_v31 = vld [vmem:[%s3381_s12 + $0xac] ss:$16 sps:$4 sm:$0xff]  }
  0xd2   : > { %1346 = vmatpush1.bf16.xpose.msra.mxu0 %v2677_v32  ;;  %v2765_v32 = vld [vmem:[%s3381_s12 + $0x2ac] ss:$16 sps:$4 sm:$0xff]  }
  0xd3   : > { %1572 = vmatpush1.bf16.xpose.msra.mxu1 %v2678_v33  ;;  %1347 = vmatprep.subr.bf16.mxu0 %v2679_v34  ;;  %v2820_v33 = vld [vmem:[%s3374_s30 + $0xa4] ss:$16 sps:$4 sm:$0xff]   ;;  %v2822_v34 = vld [vmem:[%s3374_s30 + $0xa0] ss:$16 sps:$4 sm:$0xff]  }
  0xd4   : > { %1573 = vmatprep.subr.bf16.mxu1 %v2681_v35  ;;  %v2760_v35 = vld [vmem:[%s3381_s12 + $0xa8] ss:$16 sps:$4 sm:$0xff]  }
  0xda   : > { %1348 = vmatpush1.bf16.xpose.msra.mxu0 %v2683_v36  ;;  %v2763_v36 = vld [vmem:[%s3381_s12 + $0x2a8] ss:$16 sps:$4 sm:$0xff]  }
  0xdb   : > { %1574 = vmatpush1.bf16.xpose.msra.mxu1 %v2684_v37  ;;  %1349 = vmatprep.subr.bf16.mxu0 %v2685_v38  ;;  %v2768_v37 = vld [vmem:[%s3381_s12 + $0xcc] ss:$16 sps:$4 sm:$0xff]  }
  0xdc   : > { %1575 = vmatprep.subr.bf16.mxu1 %v2687_v39  ;;  %v2771_v38 = vld [vmem:[%s3381_s12 + $0x2cc] ss:$16 sps:$4 sm:$0xff]   ;;  %v2829_v39 = vld [vmem:[%s3374_s30 + $0xc4] ss:$16 sps:$4 sm:$0xff]  }
  0xe2   : > { %1350 = vmatpush1.bf16.xpose.msra.mxu0 %v2689_v40  ;;  %v2831_v40 = vld [vmem:[%s3374_s30 + $0xc0] ss:$16 sps:$4 sm:$0xff]  }
  0xe3   : > { %1576 = vmatpush1.bf16.xpose.msra.mxu1 %v2690_v41  ;;  %1351 = vmatprep.subr.bf16.mxu0 %v2691_v42  ;;  %v2766_v41 = vld [vmem:[%s3381_s12 + $0xc8] ss:$16 sps:$4 sm:$0xff]  }
  0xe4   : > { %1577 = vmatprep.subr.bf16.mxu1 %v2693_v43  ;;  %v2769_v42 = vld [vmem:[%s3381_s12 + $0x2c8] ss:$16 sps:$4 sm:$0xff]   ;;  %v2774_v43 = vld [vmem:[%s3381_s12 + $0xec] ss:$16 sps:$4 sm:$0xff]  }
  0xea   : > { %1352 = vmatpush1.bf16.xpose.msra.mxu0 %v2695_v44  ;;  %v2777_v44 = vld [vmem:[%s3381_s12 + $0x2ec] ss:$16 sps:$4 sm:$0xff]  }
  0xeb   : > { %1578 = vmatpush1.bf16.xpose.msra.mxu1 %v2696_v45  ;;  %1353 = vmatprep.subr.bf16.mxu0 %v2697_v46  ;;  %v2838_v45 = vld [vmem:[%s3374_s30 + $0xe4] ss:$16 sps:$4 sm:$0xff]   ;;  %v2840_v46 = vld [vmem:[%s3374_s30 + $0xe0] ss:$16 sps:$4 sm:$0xff]  }
  0xec   : > { %1579 = vmatprep.subr.bf16.mxu1 %v2699_v47  ;;  %v2772_v47 = vld [vmem:[%s3381_s12 + $0xe8] ss:$16 sps:$4 sm:$0xff]  }
  0xf2   : > { %1354 = vmatpush1.bf16.xpose.msra.mxu0 %v2701_v48  ;;  %v2775_v48 = vld [vmem:[%s3381_s12 + $0x2e8] ss:$16 sps:$4 sm:$0xff]  }
  0xf3   : > { %1580 = vmatpush1.bf16.xpose.msra.mxu1 %v2702_v49  ;;  %1355 = vmatprep.subr.bf16.mxu0 %v2703_v50  ;;  %v2780_v49 = vld [vmem:[%s3381_s12 + $0x10c] ss:$16 sps:$4 sm:$0xff]  }
  0xf4   : > { %1581 = vmatprep.subr.bf16.mxu1 %v2705_v51  ;;  %v2783_v50 = vld [vmem:[%s3381_s12 + $0x30c] ss:$16 sps:$4 sm:$0xff]  }
  0xf5   : > { %v2849_v51 = vld [vmem:[%s3374_s30 + $0xc] ss:$16 sps:$4 sm:$0xff]  }
  0xfa   : > { %1356 = vmatpush1.bf16.xpose.msra.mxu0 %v2707_v52  ;;  %v2778_v52 = vld [vmem:[%s3381_s12 + $0x108] ss:$16 sps:$4 sm:$0xff]  }
  0xfb   : > { %1582 = vmatpush1.bf16.xpose.msra.mxu1 %v2708_v53  ;;  %1357 = vmatprep.subr.bf16.mxu0 %v2709_v54  ;;  %v2781_v53 = vld [vmem:[%s3381_s12 + $0x308] ss:$16 sps:$4 sm:$0xff]   ;;  %v2789_v54 = vld [vmem:[%s3381_s12 + $0x12c] ss:$16 sps:$4 sm:$0xff]  }
  0xfc   : > { %1583 = vmatprep.subr.bf16.mxu1 %v2711_v55  ;;  %v2792_v55 = vld [vmem:[%s3381_s12 + $0x32c] ss:$16 sps:$4 sm:$0xff]  }
 0x102   : > { %1358 = vmatpush1.bf16.xpose.msra.mxu0 %v2713_v56  ;;  %v2787_v56 = vld [vmem:[%s3381_s12 + $0x128] ss:$16 sps:$4 sm:$0xff]  }
 0x103   : > { %1584 = vmatpush1.bf16.xpose.msra.mxu1 %v2714_v57  ;;  %1359 = vmatprep.subr.bf16.mxu0 %v2715_v58  ;;  %v2790_v57 = vld [vmem:[%s3381_s12 + $0x328] ss:$16 sps:$4 sm:$0xff]   ;;  %v2798_v58 = vld [vmem:[%s3381_s12 + $0x14c] ss:$16 sps:$4 sm:$0xff]  }
 0x104   : > { %1585 = vmatprep.subr.bf16.mxu1 %v2717_v59  ;;  %v2801_v59 = vld [vmem:[%s3381_s12 + $0x34c] ss:$16 sps:$4 sm:$0xff]  }
 0x10a   : > { %1360 = vmatpush1.bf16.xpose.msra.mxu0 %v2719_v60  ;;  %v2796_v60 = vld [vmem:[%s3381_s12 + $0x148] ss:$16 sps:$4 sm:$0xff]  }
 0x10b   : > { %1586 = vmatpush1.bf16.xpose.msra.mxu1 %v2720_v61  ;;  %1361 = vmatprep.subr.bf16.mxu0 %v2721_v62  ;;  %v2799_v61 = vld [vmem:[%s3381_s12 + $0x348] ss:$16 sps:$4 sm:$0xff]   ;;  %v2807_v62 = vld [vmem:[%s3381_s12 + $0x16c] ss:$16 sps:$4 sm:$0xff]  }
 0x10c   : > { %1587 = vmatprep.subr.bf16.mxu1 %v2723_v63  ;;  %v2810_v63 = vld [vmem:[%s3381_s12 + $0x36c] ss:$16 sps:$4 sm:$0xff]  }
 0x112   : > { %1362 = vmatpush1.bf16.xpose.msra.mxu0 %v2725_v0  ;;  %v2805_v0 = vld [vmem:[%s3381_s12 + $0x168] ss:$16 sps:$4 sm:$0xff]  }
 0x113   : > { %1588 = vmatpush1.bf16.xpose.msra.mxu1 %v2726_v1  ;;  %1444 = vmatprep.subr.bf16.mxu0 %v2732_v2  ;;  %v2808_v1 = vld [vmem:[%s3381_s12 + $0x368] ss:$16 sps:$4 sm:$0xff]   ;;  %v2816_v2 = vld [vmem:[%s3381_s12 + $0x18c] ss:$16 sps:$4 sm:$0xff]  }
 0x114   : > { %1670 = vmatprep.subr.bf16.mxu1 %v2735_v3  ;;  %v2819_v3 = vld [vmem:[%s3381_s12 + $0x38c] ss:$16 sps:$4 sm:$0xff]  }
 0x119   : > { %1364 = vmatmul.mubr.bf16.vlgmr.msra.gmra.mrb[0].mxu0 %v2727_v4 }
 0x11a   : > { %1590 = vmatmul.mubr.bf16.vlgmr.msra.gmra.mrb[0].mxu1 %v2727_v4  ;;  %1445 = vmatpush1.bf16.xpose.msra.mxu0 %v2730_v5  ;;  %v2814_v4 = vld [vmem:[%s3381_s12 + $0x188] ss:$16 sps:$4 sm:$0xff]  }
 0x11b   : > { %1671 = vmatpush1.bf16.xpose.msra.mxu1 %v2733_v6  ;;  %1446 = vmatprep.subr.bf16.mxu0 %v2738_v7  ;;  %v2817_v5 = vld [vmem:[%s3381_s12 + $0x388] ss:$16 sps:$4 sm:$0xff]   ;;  %v2825_v6 = vld [vmem:[%s3381_s12 + $0x1ac] ss:$16 sps:$4 sm:$0xff]  }
 0x11c   : > { %1672 = vmatprep.subr.bf16.mxu1 %v2741_v8  ;;  %1373 = vmatprep.mubr.bf16.mxu0 %v2784_v9  ;;  %v2828_v7 = vld [vmem:[%s3381_s12 + $0x3ac] ss:$16 sps:$4 sm:$0xff]   ;;  %v2823_v8 = vld [vmem:[%s3381_s12 + $0x1a8] ss:$16 sps:$4 sm:$0xff]  }
 0x11d   : > { %1599 = vmatprep.mubr.bf16.mxu1 %v2784_v9  ;;  %v2826_v9 = vld [vmem:[%s3381_s12 + $0x3a8] ss:$16 sps:$4 sm:$0xff]  }
 0x121   : > { %1374 = vmatmul.mubr.bf16.gmra.mrb[4].mxu0 %v2786_v10 }
 0x122   : > { %1600 = vmatmul.mubr.bf16.gmra.mrb[4].mxu1 %v2786_v10  ;;  %1447 = vmatpush1.bf16.xpose.msra.mxu0 %v2736_v11  ;;  %v2834_v10 = vld [vmem:[%s3381_s12 + $0x1cc] ss:$16 sps:$4 sm:$0xff]  }
 0x123   : > { %1673 = vmatpush1.bf16.xpose.msra.mxu1 %v2739_v12  ;;  %1448 = vmatprep.subr.bf16.mxu0 %v2744_v13  ;;  %v2837_v11 = vld [vmem:[%s3381_s12 + $0x3cc] ss:$16 sps:$4 sm:$0xff]   ;;  %v2832_v12 = vld [vmem:[%s3381_s12 + $0x1c8] ss:$16 sps:$4 sm:$0xff]  }
 0x124   : > { %1674 = vmatprep.subr.bf16.mxu1 %v2747_v14  ;;  %1383 = vmatprep.mubr.bf16.mxu0 %v2793_v15  ;;  %v2835_v13 = vld [vmem:[%s3381_s12 + $0x3c8] ss:$16 sps:$4 sm:$0xff]   ;;  %v2843_v14 = vld [vmem:[%s3381_s12 + $0x1ec] ss:$16 sps:$4 sm:$0xff]  }
 0x125   : > { %1609 = vmatprep.mubr.bf16.mxu1 %v2793_v15  ;;  %v2846_v15 = vld [vmem:[%s3381_s12 + $0x3ec] ss:$16 sps:$4 sm:$0xff]  }
 0x129   : > { %1384 = vmatmul.mubr.bf16.gmra.mrb[8].mxu0 %v2795_v16 }
 0x12a   : > { %1610 = vmatmul.mubr.bf16.gmra.mrb[8].mxu1 %v2795_v16  ;;  %1449 = vmatpush1.bf16.xpose.msra.mxu0 %v2742_v17  ;;  %v2841_v16 = vld [vmem:[%s3381_s12 + $0x1e8] ss:$16 sps:$4 sm:$0xff]  }
 0x12b   : > { %1675 = vmatpush1.bf16.xpose.msra.mxu1 %v2745_v18  ;;  %1450 = vmatprep.subr.bf16.mxu0 %v2750_v19  ;;  %v2844_v17 = vld [vmem:[%s3381_s12 + $0x3e8] ss:$16 sps:$4 sm:$0xff]   ;;  %v2850_v19 = vld [vmem:[%s3374_s30 + $0x2c] ss:$16 sps:$4 sm:$0xff]  }
 0x12c   : > { %1676 = vmatprep.subr.bf16.mxu1 %v2753_v20  ;;  %1393 = vmatprep.mubr.bf16.mxu0 %v2802_v21  ;;  %v2847_v18 = vld [vmem:[%s3374_s30 + $0x8] ss:$16 sps:$4 sm:$0xff]  }
 0x12d   : > { %1619 = vmatprep.mubr.bf16.mxu1 %v2802_v21  ;;  %v2852_v20 = vld [vmem:[%s3374_s30 + $0x28] ss:$16 sps:$4 sm:$0xff]   ;;  %v2853_v21 = vld [vmem:[%s3374_s30 + $0x4c] ss:$16 sps:$4 sm:$0xff]  }
 0x131   : > { %1394 = vmatmul.mubr.bf16.gmra.mrb[12].mxu0 %v2804_v22 }
 0x132   : > { %1620 = vmatmul.mubr.bf16.gmra.mrb[12].mxu1 %v2804_v22  ;;  %1451 = vmatpush1.bf16.xpose.msra.mxu0 %v2748_v23  ;;  %v2855_v22 = vld [vmem:[%s3374_s30 + $0x48] ss:$16 sps:$4 sm:$0xff]   ;;  %v2856_v23 = vld [vmem:[%s3374_s30 + $0x6c] ss:$16 sps:$4 sm:$0xff]  }
 0x133   : > { %1677 = vmatpush1.bf16.xpose.msra.mxu1 %v2751_v24  ;;  %1452 = vmatprep.subr.bf16.mxu0 %v2756_v25  ;;  %v2858_v24 = vld [vmem:[%s3374_s30 + $0x68] ss:$16 sps:$4 sm:$0xff]   ;;  %v2859_v25 = vld [vmem:[%s3374_s30 + $0x8c] ss:$16 sps:$4 sm:$0xff]  }
 0x134   : > { %1678 = vmatprep.subr.bf16.mxu1 %v2759_v26  ;;  %1403 = vmatprep.mubr.bf16.mxu0 %v2811_v27  ;;  %v2861_v26 = vld [vmem:[%s3374_s30 + $0x88] ss:$16 sps:$4 sm:$0xff]  }
 0x135   : > { %1629 = vmatprep.mubr.bf16.mxu1 %v2811_v27  ;;  %v2862_v27 = vld [vmem:[%s3374_s30 + $0xac] ss:$16 sps:$4 sm:$0xff]  }
 0x139   : > { %1404 = vmatmul.mubr.bf16.gmra.mrb[16].mxu0 %v2813_v28 }
 0x13a   : > { %1630 = vmatmul.mubr.bf16.gmra.mrb[16].mxu1 %v2813_v28  ;;  %1453 = vmatpush1.bf16.xpose.msra.mxu0 %v2754_v29  ;;  %v2864_v28 = vld [vmem:[%s3374_s30 + $0xa8] ss:$16 sps:$4 sm:$0xff]   ;;  %v2865_v29 = vld [vmem:[%s3374_s30 + $0xcc] ss:$16 sps:$4 sm:$0xff]  }
 0x13b   : > { %1679 = vmatpush1.bf16.xpose.msra.mxu1 %v2757_v30  ;;  %1454 = vmatprep.subr.bf16.mxu0 %v2762_v31  ;;  %v2867_v30 = vld [vmem:[%s3374_s30 + $0xc8] ss:$16 sps:$4 sm:$0xff]   ;;  %v2868_v31 = vld [vmem:[%s3374_s30 + $0xec] ss:$16 sps:$4 sm:$0xff]  }
 0x13c   : > { %1680 = vmatprep.subr.bf16.mxu1 %v2765_v32  ;;  %1413 = vmatprep.mubr.bf16.mxu0 %v2820_v33  ;;  %v2870_v32 = vld [vmem:[%s3374_s30 + $0xe8] ss:$16 sps:$4 sm:$0xff]  }
 0x13d   : > { %1639 = vmatprep.mubr.bf16.mxu1 %v2820_v33  ;;  %v307_v33 = vld [vmem:[#allocation2] sm:$0xff] }
 0x141   : > { %1414 = vmatmul.mubr.bf16.gmra.mrb[20].mxu0 %v2822_v34 }
 0x142   : > { %1640 = vmatmul.mubr.bf16.gmra.mrb[20].mxu1 %v2822_v34  ;;  %1455 = vmatpush1.bf16.xpose.msra.mxu0 %v2760_v35  ;;  %v309_v34 = vld [vmem:[#allocation2 + $0x10] sm:$0xff]  ;;  %v308_v35 = vld [vmem:[#allocation2 + $0x8] sm:$0xff] }
 0x143   : > { %1681 = vmatpush1.bf16.xpose.msra.mxu1 %v2763_v36  ;;  %1456 = vmatprep.subr.bf16.mxu0 %v2768_v37  ;;  %v310_v36 = vld [vmem:[#allocation2 + $0x18] sm:$0xff] }
 0x144   : > { %1682 = vmatprep.subr.bf16.mxu1 %v2771_v38  ;;  %1423 = vmatprep.mubr.bf16.mxu0 %v2829_v39 }
 0x145   : > { %1649 = vmatprep.mubr.bf16.mxu1 %v2829_v39  ;;  %v311_v39 = vld [vmem:[#allocation2 + $0x20] sm:$0xff] }
 0x149   : > { %1424 = vmatmul.mubr.bf16.gmra.mrb[24].mxu0 %v2831_v40 }
 0x14a   : > { %1650 = vmatmul.mubr.bf16.gmra.mrb[24].mxu1 %v2831_v40  ;;  %1457 = vmatpush1.bf16.xpose.msra.mxu0 %v2766_v41  ;;  %v313_v40 = vld [vmem:[#allocation2 + $0x30] sm:$0xff] }
 0x14b   : > { %1683 = vmatpush1.bf16.xpose.msra.mxu1 %v2769_v42  ;;  %1458 = vmatprep.subr.bf16.mxu0 %v2774_v43 }
 0x14c   : > { %1684 = vmatprep.subr.bf16.mxu1 %v2777_v44  ;;  %1433 = vmatprep.mubr.bf16.mxu0 %v2838_v45 }
 0x14d   : > { %1659 = vmatprep.mubr.bf16.mxu1 %v2838_v45  ;;  %v312_v45 = vld [vmem:[#allocation2 + $0x28] sm:$0xff] }
 0x151   : > { %1434 = vmatmul.mubr.bf16.gmra.mrb[28].mxu0 %v2840_v46 }
 0x152   : > { %1660 = vmatmul.mubr.bf16.gmra.mrb[28].mxu1 %v2840_v46  ;;  %1459 = vmatpush1.bf16.xpose.msra.mxu0 %v2772_v47  ;;  %v314_v46 = vld [vmem:[#allocation2 + $0x38] sm:$0xff] }
 0x153   : > { %1685 = vmatpush1.bf16.xpose.msra.mxu1 %v2775_v48  ;;  %1460 = vmatprep.subr.bf16.mxu0 %v2780_v49 }
 0x154   : > { %1686 = vmatprep.subr.bf16.mxu1 %v2783_v50  ;;  %1476 = vmatprep.mubr.bf16.mxu0 %v2849_v51 }
 0x155   : > { %1702 = vmatprep.mubr.bf16.mxu1 %v2849_v51 }
 0x15a   : > { %1461 = vmatpush1.bf16.xpose.msra.mxu0 %v2778_v52 }
 0x15b   : > { %1687 = vmatpush1.bf16.xpose.msra.mxu1 %v2781_v53  ;;  %1462 = vmatprep.subr.bf16.mxu0 %v2789_v54 }
 0x15c   : > { %1688 = vmatprep.subr.bf16.mxu1 %v2792_v55 }
 0x162   : > { %1463 = vmatpush1.bf16.xpose.msra.mxu0 %v2787_v56 }
 0x163   : > { %1689 = vmatpush1.bf16.xpose.msra.mxu1 %v2790_v57  ;;  %1464 = vmatprep.subr.bf16.mxu0 %v2798_v58  ;;  %v315_v57 = vld [vmem:[#allocation2 + $0x40] sm:$0xff]  ;;  %v317_v58 = vld [vmem:[#allocation2 + $0x50] sm:$0xff] }
 0x164   : > { %1690 = vmatprep.subr.bf16.mxu1 %v2801_v59  ;;  %v316_v59 = vld [vmem:[#allocation2 + $0x48] sm:$0xff] }
 0x16a   : > { %1465 = vmatpush1.bf16.xpose.msra.mxu0 %v2796_v60  ;;  %v318_v60 = vld [vmem:[#allocation2 + $0x58] sm:$0xff] }
 0x16b   : > { %1691 = vmatpush1.bf16.xpose.msra.mxu1 %v2799_v61  ;;  %1466 = vmatprep.subr.bf16.mxu0 %v2807_v62 }
 0x16c   : > { %1692 = vmatprep.subr.bf16.mxu1 %v2810_v63  ;;  %v319_v63 = vld [vmem:[#allocation2 + $0x60] sm:$0xff] }
 0x172   : > { %1467 = vmatpush1.bf16.xpose.msra.mxu0 %v2805_v0  ;;  %v321_v0 = vld [vmem:[#allocation2 + $0x70] sm:$0xff] }
 0x173   : > { %1693 = vmatpush1.bf16.xpose.msra.mxu1 %v2808_v1  ;;  %1468 = vmatprep.subr.bf16.mxu0 %v2816_v2 }
 0x174   : > { %1694 = vmatprep.subr.bf16.mxu1 %v2819_v3 }
 0x17a   : > { %1469 = vmatpush1.bf16.xpose.msra.mxu0 %v2814_v4 }
 0x17b   : > { %1695 = vmatpush1.bf16.xpose.msra.mxu1 %v2817_v5  ;;  %1470 = vmatprep.subr.bf16.mxu0 %v2825_v6  ;;  %v320_v5 = vld [vmem:[#allocation2 + $0x68] sm:$0xff]  ;;  %v322_v6 = vld [vmem:[#allocation2 + $0x78] sm:$0xff] }
 0x17c   : > { %1696 = vmatprep.subr.bf16.mxu1 %v2828_v7 }
 0x182   : > { %1471 = vmatpush1.bf16.xpose.msra.mxu0 %v2823_v8 }
 0x183   : > { %1697 = vmatpush1.bf16.xpose.msra.mxu1 %v2826_v9  ;;  %1472 = vmatprep.subr.bf16.mxu0 %v2834_v10 }
 0x184   : > { %1698 = vmatprep.subr.bf16.mxu1 %v2837_v11 }
 0x18a   : > { %1473 = vmatpush1.bf16.xpose.msra.mxu0 %v2832_v12 }
 0x18b   : > { %1699 = vmatpush1.bf16.xpose.msra.mxu1 %v2835_v13  ;;  %1474 = vmatprep.subr.bf16.mxu0 %v2843_v14 }
 0x18c   : > { %1700 = vmatprep.subr.bf16.mxu1 %v2846_v15 }
 0x192   : > { %1475 = vmatpush1.bf16.xpose.msra.mxu0 %v2841_v16 }
 0x193   : > { %1701 = vmatpush1.bf16.xpose.msra.mxu1 %v2844_v17  ;;  %v323_v17 = vld [vmem:[#allocation2 + $0x80] sm:$0xff] }
 0x199   : > { %1477 = vmatmul.mubr.bf16.vlgmr.msra.gmra.mrb[0].mxu0 %v2847_v18 }
 0x19a   : > { %1703 = vmatmul.mubr.bf16.vlgmr.msra.gmra.mrb[0].mxu1 %v2847_v18  ;;  %1486 = vmatprep.mubr.bf16.mxu0 %v2850_v19  ;;  %v325_v18 = vld [vmem:[#allocation2 + $0x90] sm:$0xff] }
 0x19b   : > { %1712 = vmatprep.mubr.bf16.mxu1 %v2850_v19  ;;  %v324_v19 = vld [vmem:[#allocation2 + $0x88] sm:$0xff] }
 0x1a1   : > { %1487 = vmatmul.mubr.bf16.gmra.mrb[4].mxu0 %v2852_v20 }
 0x1a2   : > { %1713 = vmatmul.mubr.bf16.gmra.mrb[4].mxu1 %v2852_v20  ;;  %1496 = vmatprep.mubr.bf16.mxu0 %v2853_v21  ;;  %v326_v20 = vld [vmem:[#allocation2 + $0x98] sm:$0xff] }
 0x1a3   : > { %1722 = vmatprep.mubr.bf16.mxu1 %v2853_v21 }
 0x1a9   : > { %1497 = vmatmul.mubr.bf16.gmra.mrb[8].mxu0 %v2855_v22 }
 0x1aa   : > { %1723 = vmatmul.mubr.bf16.gmra.mrb[8].mxu1 %v2855_v22  ;;  %1506 = vmatprep.mubr.bf16.mxu0 %v2856_v23 }
 0x1ab   : > { %1732 = vmatprep.mubr.bf16.mxu1 %v2856_v23  ;;  %v327_v23 = vld [vmem:[#allocation2 + $0xa0] sm:$0xff] }
 0x1b1   : > { %1507 = vmatmul.mubr.bf16.gmra.mrb[12].mxu0 %v2858_v24 }
 0x1b2   : > { %1733 = vmatmul.mubr.bf16.gmra.mrb[12].mxu1 %v2858_v24  ;;  %1516 = vmatprep.mubr.bf16.mxu0 %v2859_v25  ;;  %v329_v24 = vld [vmem:[#allocation2 + $0xb0] sm:$0xff] }
 0x1b3   : > { %1742 = vmatprep.mubr.bf16.mxu1 %v2859_v25 }
 0x1b9   : > { %1517 = vmatmul.mubr.bf16.gmra.mrb[16].mxu0 %v2861_v26 }
 0x1ba   : > { %1743 = vmatmul.mubr.bf16.gmra.mrb[16].mxu1 %v2861_v26  ;;  %1526 = vmatprep.mubr.bf16.mxu0 %v2862_v27 }
 0x1bb   : > { %1752 = vmatprep.mubr.bf16.mxu1 %v2862_v27 }
 0x1c1   : > { %1527 = vmatmul.mubr.bf16.gmra.mrb[20].mxu0 %v2864_v28 }
 0x1c2   : > { %1753 = vmatmul.mubr.bf16.gmra.mrb[20].mxu1 %v2864_v28  ;;  %1536 = vmatprep.mubr.bf16.mxu0 %v2865_v29 }
 0x1c3   : > { %1762 = vmatprep.mubr.bf16.mxu1 %v2865_v29  ;;  %v328_v29 = vld [vmem:[#allocation2 + $0xa8] sm:$0xff] }
 0x1c9   : > { %1537 = vmatmul.mubr.bf16.gmra.mrb[24].mxu0 %v2867_v30 }
 0x1ca   : > { %1763 = vmatmul.mubr.bf16.gmra.mrb[24].mxu1 %v2867_v30  ;;  %1546 = vmatprep.mubr.bf16.mxu0 %v2868_v31  ;;  %v330_v30 = vld [vmem:[#allocation2 + $0xb8] sm:$0xff] }
 0x1cb   : > { %1772 = vmatprep.mubr.bf16.mxu1 %v2868_v31 }
 0x1d1   : > { %1547 = vmatmul.mubr.bf16.gmra.mrb[28].mxu0 %v2870_v32 }
 0x1d2   : > { %1773 = vmatmul.mubr.bf16.gmra.mrb[28].mxu1 %v2870_v32 }
 0x26c   : > { %v1478_v37 = vpop.f32.mrb[0].mxu0 }
 0x26d   : > { %v1704_v38 = vpop.f32.mrb[0].mxu1  ;;  %v1783_v41 = vadd.f32 %v1478_v37, %v307_v33  ;;  %v1480_v43 = vpop.f32.mrb[1].mxu0 }
 0x26e   : > { %v1785_v42 = vadd.f32 %v1704_v38, %v309_v34  ;;  %v1706_v44 = vpop.f32.mrb[1].mxu1  ;;  %v1784_v47 = vadd.f32 %v1480_v43, %v308_v35  ;;  %v1482_v49 = vpop.f32.mrb[2].mxu0  ;;  %v332_v43 = vld [vmem:[#allocation2 + $0xc8] sm:$0xff] }
 0x26f   : > { %v1786_v48 = vadd.f32 %v1706_v44, %v310_v36  ;;  %v1708_v50 = vpop.f32.mrb[2].mxu1  ;;  %1847 = vst [vmem:[#allocation2] sm:$0xff] %v1783_v41  ;;  %v1787_v51 = vadd.f32 %v1482_v49, %v311_v39  ;;  %v1484_v53 = vpop.f32.mrb[3].mxu0  ;;  %v331_v41 = vld [vmem:[#allocation2 + $0xc0] sm:$0xff]  ;;  %v334_v44 = vld [vmem:[#allocation2 + $0xd8] sm:$0xff] }
 0x270   : > { %1849 = vst [vmem:[#allocation2 + $0x10] sm:$0xff] %v1785_v42  ;;  %v1789_v52 = vadd.f32 %v1708_v50, %v313_v40  ;;  %v1710_v54 = vpop.f32.mrb[3].mxu1  ;;  %1848 = vst [vmem:[#allocation2 + $0x8] sm:$0xff] %v1784_v47  ;;  %v1788_v55 = vadd.f32 %v1484_v53, %v312_v45  ;;  %v333_v42 = vld [vmem:[#allocation2 + $0xd0] sm:$0xff]  ;;  %v335_v47 = vld [vmem:[#allocation2 + $0xe0] sm:$0xff] }
 0x271   : > { %1850 = vst [vmem:[#allocation2 + $0x18] sm:$0xff] %v1786_v48  ;;  %v1790_v56 = vadd.f32 %v1710_v54, %v314_v46  ;;  %1851 = vst [vmem:[#allocation2 + $0x20] sm:$0xff] %v1787_v51  ;;  %v337_v48 = vld [vmem:[#allocation2 + $0xf0] sm:$0xff]  ;;  %v336_v53 = vld [vmem:[#allocation2 + $0xe8] sm:$0xff] }
 0x272   : > { %1853 = vst [vmem:[#allocation2 + $0x30] sm:$0xff] %v1789_v52  ;;  %1852 = vst [vmem:[#allocation2 + $0x28] sm:$0xff] %v1788_v55  ;;  %v338_v54 = vld [vmem:[#allocation2 + $0xf8] sm:$0xff] }
 0x273   : > { %1854 = vst [vmem:[#allocation2 + $0x38] sm:$0xff] %v1790_v56 }
 0x274   : > { %v1488_v61 = vpop.f32.mrb[4].mxu0 }
 0x275   : > { %v1714_v62 = vpop.f32.mrb[4].mxu1  ;;  %v1791_v1 = vadd.f32 %v1488_v61, %v315_v57  ;;  %v1490_v3 = vpop.f32.mrb[5].mxu0 }
 0x276   : > { %v1793_v2 = vadd.f32 %v1714_v62, %v317_v58  ;;  %v1716_v4 = vpop.f32.mrb[5].mxu1  ;;  %v1792_v7 = vadd.f32 %v1490_v3, %v316_v59  ;;  %v1492_v9 = vpop.f32.mrb[6].mxu0  ;;  %v340_v3 = vld [vmem:[#allocation2 + $0x108] sm:$0xff] }
 0x277   : > { %v1794_v8 = vadd.f32 %v1716_v4, %v318_v60  ;;  %v1718_v10 = vpop.f32.mrb[6].mxu1  ;;  %1855 = vst [vmem:[#allocation2 + $0x40] sm:$0xff] %v1791_v1  ;;  %v1795_v11 = vadd.f32 %v1492_v9, %v319_v63  ;;  %v1494_v13 = vpop.f32.mrb[7].mxu0  ;;  %v339_v1 = vld [vmem:[#allocation2 + $0x100] sm:$0xff]  ;;  %v342_v4 = vld [vmem:[#allocation2 + $0x118] sm:$0xff] }
 0x278   : > { %1857 = vst [vmem:[#allocation2 + $0x50] sm:$0xff] %v1793_v2  ;;  %v1797_v12 = vadd.f32 %v1718_v10, %v321_v0  ;;  %v1720_v14 = vpop.f32.mrb[7].mxu1  ;;  %1856 = vst [vmem:[#allocation2 + $0x48] sm:$0xff] %v1792_v7  ;;  %v1796_v15 = vadd.f32 %v1494_v13, %v320_v5  ;;  %v341_v2 = vld [vmem:[#allocation2 + $0x110] sm:$0xff]  ;;  %v343_v7 = vld [vmem:[#allocation2 + $0x120] sm:$0xff] }
 0x279   : > { %1858 = vst [vmem:[#allocation2 + $0x58] sm:$0xff] %v1794_v8  ;;  %v1798_v16 = vadd.f32 %v1720_v14, %v322_v6  ;;  %1859 = vst [vmem:[#allocation2 + $0x60] sm:$0xff] %v1795_v11  ;;  %v345_v8 = vld [vmem:[#allocation2 + $0x130] sm:$0xff]  ;;  %v344_v13 = vld [vmem:[#allocation2 + $0x128] sm:$0xff] }
 0x27a   : > { %1861 = vst [vmem:[#allocation2 + $0x70] sm:$0xff] %v1797_v12  ;;  %1860 = vst [vmem:[#allocation2 + $0x68] sm:$0xff] %v1796_v15  ;;  %v346_v14 = vld [vmem:[#allocation2 + $0x138] sm:$0xff] }
 0x27b   : > { %1862 = vst [vmem:[#allocation2 + $0x78] sm:$0xff] %v1798_v16 }
 0x27c   : > { %v1498_v21 = vpop.f32.mrb[8].mxu0 }
 0x27d   : > { %v1724_v22 = vpop.f32.mrb[8].mxu1  ;;  %v1799_v25 = vadd.f32 %v1498_v21, %v323_v17  ;;  %v1500_v27 = vpop.f32.mrb[9].mxu0 }
 0x27e   : > { %v1801_v26 = vadd.f32 %v1724_v22, %v325_v18  ;;  %v1726_v28 = vpop.f32.mrb[9].mxu1  ;;  %v1800_v31 = vadd.f32 %v1500_v27, %v324_v19  ;;  %v1502_v33 = vpop.f32.mrb[10].mxu0  ;;  %v348_v27 = vld [vmem:[#allocation2 + $0x148] sm:$0xff] }
 0x27f   : > { %v1802_v32 = vadd.f32 %v1726_v28, %v326_v20  ;;  %v1728_v34 = vpop.f32.mrb[10].mxu1  ;;  %1863 = vst [vmem:[#allocation2 + $0x80] sm:$0xff] %v1799_v25  ;;  %v1803_v35 = vadd.f32 %v1502_v33, %v327_v23  ;;  %v1504_v37 = vpop.f32.mrb[11].mxu0  ;;  %v347_v25 = vld [vmem:[#allocation2 + $0x140] sm:$0xff]  ;;  %v350_v28 = vld [vmem:[#allocation2 + $0x158] sm:$0xff] }
 0x280   : > { %1865 = vst [vmem:[#allocation2 + $0x90] sm:$0xff] %v1801_v26  ;;  %v1805_v36 = vadd.f32 %v1728_v34, %v329_v24  ;;  %v1730_v38 = vpop.f32.mrb[11].mxu1  ;;  %1864 = vst [vmem:[#allocation2 + $0x88] sm:$0xff] %v1800_v31  ;;  %v1804_v39 = vadd.f32 %v1504_v37, %v328_v29  ;;  %v349_v26 = vld [vmem:[#allocation2 + $0x150] sm:$0xff]  ;;  %v351_v31 = vld [vmem:[#allocation2 + $0x160] sm:$0xff] }
 0x281   : > { %1866 = vst [vmem:[#allocation2 + $0x98] sm:$0xff] %v1802_v32  ;;  %v1806_v40 = vadd.f32 %v1730_v38, %v330_v30  ;;  %1867 = vst [vmem:[#allocation2 + $0xa0] sm:$0xff] %v1803_v35  ;;  %v353_v32 = vld [vmem:[#allocation2 + $0x170] sm:$0xff]  ;;  %v352_v37 = vld [vmem:[#allocation2 + $0x168] sm:$0xff] }
 0x282   : > { %1869 = vst [vmem:[#allocation2 + $0xb0] sm:$0xff] %v1805_v36  ;;  %1868 = vst [vmem:[#allocation2 + $0xa8] sm:$0xff] %v1804_v39  ;;  %v354_v38 = vld [vmem:[#allocation2 + $0x178] sm:$0xff] }
 0x283   : > { %1870 = vst [vmem:[#allocation2 + $0xb8] sm:$0xff] %v1806_v40 }
 0x284   : > { %v1508_v45 = vpop.f32.mrb[12].mxu0 }
 0x285   : > { %v1734_v46 = vpop.f32.mrb[12].mxu1  ;;  %v1807_v49 = vadd.f32 %v1508_v45, %v331_v41  ;;  %v1510_v51 = vpop.f32.mrb[13].mxu0 }
 0x286   : > { %v1809_v50 = vadd.f32 %v1734_v46, %v333_v42  ;;  %v1736_v52 = vpop.f32.mrb[13].mxu1  ;;  %v1808_v55 = vadd.f32 %v1510_v51, %v332_v43  ;;  %v1512_v57 = vpop.f32.mrb[14].mxu0  ;;  %v356_v51 = vld [vmem:[#allocation2 + $0x188] sm:$0xff] }
 0x287   : > { %v1810_v56 = vadd.f32 %v1736_v52, %v334_v44  ;;  %v1738_v58 = vpop.f32.mrb[14].mxu1  ;;  %1871 = vst [vmem:[#allocation2 + $0xc0] sm:$0xff] %v1807_v49  ;;  %v1811_v59 = vadd.f32 %v1512_v57, %v335_v47  ;;  %v1514_v61 = vpop.f32.mrb[15].mxu0  ;;  %v355_v49 = vld [vmem:[#allocation2 + $0x180] sm:$0xff]  ;;  %v358_v52 = vld [vmem:[#allocation2 + $0x198] sm:$0xff] }
 0x288   : > { %1873 = vst [vmem:[#allocation2 + $0xd0] sm:$0xff] %v1809_v50  ;;  %v1813_v60 = vadd.f32 %v1738_v58, %v337_v48  ;;  %v1740_v62 = vpop.f32.mrb[15].mxu1  ;;  %1872 = vst [vmem:[#allocation2 + $0xc8] sm:$0xff] %v1808_v55  ;;  %v1812_v63 = vadd.f32 %v1514_v61, %v336_v53  ;;  %v357_v50 = vld [vmem:[#allocation2 + $0x190] sm:$0xff]  ;;  %v359_v55 = vld [vmem:[#allocation2 + $0x1a0] sm:$0xff] }
 0x289   : > { %1874 = vst [vmem:[#allocation2 + $0xd8] sm:$0xff] %v1810_v56  ;;  %v1814_v0 = vadd.f32 %v1740_v62, %v338_v54  ;;  %1875 = vst [vmem:[#allocation2 + $0xe0] sm:$0xff] %v1811_v59  ;;  %v361_v56 = vld [vmem:[#allocation2 + $0x1b0] sm:$0xff]  ;;  %v360_v61 = vld [vmem:[#allocation2 + $0x1a8] sm:$0xff] }
 0x28a   : > { %1877 = vst [vmem:[#allocation2 + $0xf0] sm:$0xff] %v1813_v60  ;;  %1876 = vst [vmem:[#allocation2 + $0xe8] sm:$0xff] %v1812_v63  ;;  %v362_v62 = vld [vmem:[#allocation2 + $0x1b8] sm:$0xff] }
 0x28b   : > { %1878 = vst [vmem:[#allocation2 + $0xf8] sm:$0xff] %v1814_v0 }
 0x28c   : > { %v1518_v5 = vpop.f32.mrb[16].mxu0 }
 0x28d   : > { %v1744_v6 = vpop.f32.mrb[16].mxu1  ;;  %v1815_v9 = vadd.f32 %v1518_v5, %v339_v1  ;;  %v1520_v11 = vpop.f32.mrb[17].mxu0 }
 0x28e   : > { %v1817_v10 = vadd.f32 %v1744_v6, %v341_v2  ;;  %v1746_v12 = vpop.f32.mrb[17].mxu1  ;;  %v1816_v15 = vadd.f32 %v1520_v11, %v340_v3  ;;  %v1522_v17 = vpop.f32.mrb[18].mxu0  ;;  %v364_v11 = vld [vmem:[#allocation2 + $0x1c8] sm:$0xff] }
 0x28f   : > { %v1818_v16 = vadd.f32 %v1746_v12, %v342_v4  ;;  %v1748_v18 = vpop.f32.mrb[18].mxu1  ;;  %1879 = vst [vmem:[#allocation2 + $0x100] sm:$0xff] %v1815_v9  ;;  %v1819_v19 = vadd.f32 %v1522_v17, %v343_v7  ;;  %v1524_v21 = vpop.f32.mrb[19].mxu0  ;;  %v363_v9 = vld [vmem:[#allocation2 + $0x1c0] sm:$0xff]  ;;  %v366_v12 = vld [vmem:[#allocation2 + $0x1d8] sm:$0xff] }
 0x290   : > { %1881 = vst [vmem:[#allocation2 + $0x110] sm:$0xff] %v1817_v10  ;;  %v1821_v20 = vadd.f32 %v1748_v18, %v345_v8  ;;  %v1750_v22 = vpop.f32.mrb[19].mxu1  ;;  %1880 = vst [vmem:[#allocation2 + $0x108] sm:$0xff] %v1816_v15  ;;  %v1820_v23 = vadd.f32 %v1524_v21, %v344_v13  ;;  %v365_v10 = vld [vmem:[#allocation2 + $0x1d0] sm:$0xff]  ;;  %v367_v15 = vld [vmem:[#allocation2 + $0x1e0] sm:$0xff] }
 0x291   : > { %1882 = vst [vmem:[#allocation2 + $0x118] sm:$0xff] %v1818_v16  ;;  %v1822_v24 = vadd.f32 %v1750_v22, %v346_v14  ;;  %1883 = vst [vmem:[#allocation2 + $0x120] sm:$0xff] %v1819_v19  ;;  %v369_v16 = vld [vmem:[#allocation2 + $0x1f0] sm:$0xff]  ;;  %v368_v21 = vld [vmem:[#allocation2 + $0x1e8] sm:$0xff] }
 0x292   : > { %1885 = vst [vmem:[#allocation2 + $0x130] sm:$0xff] %v1821_v20  ;;  %1884 = vst [vmem:[#allocation2 + $0x128] sm:$0xff] %v1820_v23  ;;  %v370_v22 = vld [vmem:[#allocation2 + $0x1f8] sm:$0xff] }
 0x293   : > { %1886 = vst [vmem:[#allocation2 + $0x138] sm:$0xff] %v1822_v24 }
 0x294   : > { %v1528_v29 = vpop.f32.mrb[20].mxu0 }
 0x295   : > { %v1754_v30 = vpop.f32.mrb[20].mxu1  ;;  %v1823_v33 = vadd.f32 %v1528_v29, %v347_v25  ;;  %v1530_v35 = vpop.f32.mrb[21].mxu0 }
 0x296   : > { %v1825_v34 = vadd.f32 %v1754_v30, %v349_v26  ;;  %v1756_v36 = vpop.f32.mrb[21].mxu1  ;;  %v1824_v39 = vadd.f32 %v1530_v35, %v348_v27  ;;  %v1532_v41 = vpop.f32.mrb[22].mxu0  ;;  %v1917_v35 = vld [vmem:[#allocation2 + $0x10] sm:$0xff] (!%p2420_p10) }
 0x297   : > { %v1826_v40 = vadd.f32 %v1756_v36, %v350_v28  ;;  %v1758_v42 = vpop.f32.mrb[22].mxu1  ;;  %1887 = vst [vmem:[#allocation2 + $0x140] sm:$0xff] %v1823_v33  ;;  %v1827_v43 = vadd.f32 %v1532_v41, %v351_v31  ;;  %v1534_v45 = vpop.f32.mrb[23].mxu0  ;;  %v1915_v33 = vld [vmem:[#allocation2] sm:$0xff] (!%p2420_p10)  ;;  %v1920_v41 = vld [vmem:[#allocation2 + $0x28] sm:$0xff] (!%p2420_p10) }
 0x298   : > { %1889 = vst [vmem:[#allocation2 + $0x150] sm:$0xff] %v1825_v34  ;;  %v1829_v44 = vadd.f32 %v1758_v42, %v353_v32  ;;  %v1760_v46 = vpop.f32.mrb[23].mxu1  ;;  %1888 = vst [vmem:[#allocation2 + $0x148] sm:$0xff] %v1824_v39  ;;  %v1828_v47 = vadd.f32 %v1534_v45, %v352_v37  ;;  %v1916_v34 = vld [vmem:[#allocation2 + $0x8] sm:$0xff] (!%p2420_p10)  ;;  %v1979_v36 = vmax.f32 (!%p2420_p10), %v1915_v33, 0.0  ;;  %v1918_v39 = vld [vmem:[#allocation2 + $0x18] sm:$0xff] (!%p2420_p10) }
 0x299   : > { %1890 = vst [vmem:[#allocation2 + $0x158] sm:$0xff] %v1826_v40  ;;  %v1830_v48 = vadd.f32 %v1760_v46, %v354_v38  ;;  %1891 = vst [vmem:[#allocation2 + $0x160] sm:$0xff] %v1827_v43  ;;  %v1980_v37 = vmax.f32 (!%p2420_p10), %v1916_v34, 0.0  ;;  %v1981_v38 = vmax.f32 (!%p2420_p10), %v1917_v35, 0.0  ;;  %v1919_v40 = vld [vmem:[#allocation2 + $0x20] sm:$0xff] (!%p2420_p10)  ;;  %v1982_v42 = vmax.f32 (!%p2420_p10), %v1918_v39, 0.0 }
 0x29a   : > { %1893 = vst [vmem:[#allocation2 + $0x170] sm:$0xff] %v1829_v44  ;;  %1892 = vst [vmem:[#allocation2 + $0x168] sm:$0xff] %v1828_v47  ;;  %v1983_v43 = vmax.f32 (!%p2420_p10), %v1919_v40, 0.0  ;;  %v1984_v44 = vmax.f32 (!%p2420_p10), %v1920_v41, 0.0  ;;  %v1921_v45 = vld [vmem:[#allocation2 + $0x30] sm:$0xff] (!%p2420_p10)  ;;  %v1922_v46 = vld [vmem:[#allocation2 + $0x38] sm:$0xff] (!%p2420_p10) }
 0x29b   : > { %1894 = vst [vmem:[#allocation2 + $0x178] sm:$0xff] %v1830_v48  ;;  %v1923_v47 = vld [vmem:[#allocation2 + $0x40] sm:$0xff] (!%p2420_p10)  ;;  %2043 = vst [vmem:[%s3390_s24] sm:$0xff] (!%p2420_p10), %v1979_v36  ;;  %v1985_v48 = vmax.f32 (!%p2420_p10), %v1921_v45, 0.0  ;;  %v1948_v35 = vld [vmem:[#allocation2 + $0x108] sm:$0xff] (!%p2420_p10) }
 0x29c   : > { %v1538_v53 = vpop.f32.mrb[24].mxu0  ;;  %2044 = vst [vmem:[%s3390_s24 + $0x8] sm:$0xff] (!%p2420_p10), %v1980_v37  ;;  %2045 = vst [vmem:[%s3390_s24 + $0x10] sm:$0xff] (!%p2420_p10), %v1981_v38  ;;  %v1949_v36 = vld [vmem:[#allocation2 + $0x110] sm:$0xff] (!%p2420_p10)  ;;  %v1950_v37 = vld [vmem:[#allocation2 + $0x118] sm:$0xff] (!%p2420_p10)  ;;  %v2012_v38 = vmax.f32 (!%p2420_p10), %v1948_v35, 0.0 }
 0x29d   : > { %v1764_v54 = vpop.f32.mrb[24].mxu1  ;;  %v1831_v57 = vadd.f32 %v1538_v53, %v355_v49  ;;  %v1540_v59 = vpop.f32.mrb[25].mxu0  ;;  %v1986_v49 = vmax.f32 (!%p2420_p10), %v1922_v46, 0.0  ;;  %v1926_v53 = vld [vmem:[#allocation2 + $0x58] sm:$0xff] (!%p2420_p10)  ;;  %2046 = vst [vmem:[%s3390_s24 + $0x18] sm:$0xff] (!%p2420_p10), %v1982_v42  ;;  %2047 = vst [vmem:[%s3390_s24 + $0x20] sm:$0xff] (!%p2420_p10), %v1983_v43 }
 0x29e   : > { %v1833_v58 = vadd.f32 %v1764_v54, %v357_v50  ;;  %v1766_v60 = vpop.f32.mrb[25].mxu1  ;;  %v1832_v63 = vadd.f32 %v1540_v59, %v356_v51  ;;  %v1542_v1 = vpop.f32.mrb[26].mxu0  ;;  %v1987_v50 = vmax.f32 (!%p2420_p10), %v1923_v47, 0.0  ;;  %v1924_v51 = vld [vmem:[#allocation2 + $0x48] sm:$0xff] (!%p2420_p10)  ;;  %2048 = vst [vmem:[%s3390_s24 + $0x28] sm:$0xff] (!%p2420_p10), %v1984_v44  ;;  %v1929_v59 = vld [vmem:[#allocation2 + $0x70] sm:$0xff] (!%p2420_p10) }
 0x29f   : > { %v1834_v0 = vadd.f32 %v1766_v60, %v358_v52  ;;  %v1768_v2 = vpop.f32.mrb[26].mxu1  ;;  %1895 = vst [vmem:[#allocation2 + $0x180] sm:$0xff] %v1831_v57  ;;  %v1835_v3 = vadd.f32 %v1542_v1, %v359_v55  ;;  %v1544_v5 = vpop.f32.mrb[27].mxu0  ;;  %v1925_v52 = vld [vmem:[#allocation2 + $0x50] sm:$0xff] (!%p2420_p10)  ;;  %v1988_v54 = vmax.f32 (!%p2420_p10), %v1924_v51, 0.0  ;;  %v1927_v57 = vld [vmem:[#allocation2 + $0x60] sm:$0xff] (!%p2420_p10) }
 0x2a0   : > { %1897 = vst [vmem:[#allocation2 + $0x190] sm:$0xff] %v1833_v58  ;;  %v1837_v4 = vadd.f32 %v1768_v2, %v361_v56  ;;  %v1770_v6 = vpop.f32.mrb[27].mxu1  ;;  %1896 = vst [vmem:[#allocation2 + $0x188] sm:$0xff] %v1832_v63  ;;  %v1836_v7 = vadd.f32 %v1544_v5, %v360_v61  ;;  %v1989_v55 = vmax.f32 (!%p2420_p10), %v1925_v52, 0.0  ;;  %v1990_v56 = vmax.f32 (!%p2420_p10), %v1926_v53, 0.0  ;;  %v1928_v58 = vld [vmem:[#allocation2 + $0x68] sm:$0xff] (!%p2420_p10) }
 0x2a1   : > { %1898 = vst [vmem:[#allocation2 + $0x198] sm:$0xff] %v1834_v0  ;;  %v1838_v8 = vadd.f32 %v1770_v6, %v362_v62  ;;  %1899 = vst [vmem:[#allocation2 + $0x1a0] sm:$0xff] %v1835_v3  ;;  %v1991_v60 = vmax.f32 (!%p2420_p10), %v1927_v57, 0.0  ;;  %v1992_v61 = vmax.f32 (!%p2420_p10), %v1928_v58, 0.0  ;;  %v1993_v62 = vmax.f32 (!%p2420_p10), %v1929_v59, 0.0  ;;  %v1930_v63 = vld [vmem:[#allocation2 + $0x78] sm:$0xff] (!%p2420_p10) }
 0x2a2   : > { %1901 = vst [vmem:[#allocation2 + $0x1b0] sm:$0xff] %v1837_v4  ;;  %1900 = vst [vmem:[#allocation2 + $0x1a8] sm:$0xff] %v1836_v7  ;;  %v1931_v0 = vld [vmem:[#allocation2 + $0x80] sm:$0xff] (!%p2420_p10)  ;;  %v1932_v1 = vld [vmem:[#allocation2 + $0x88] sm:$0xff] (!%p2420_p10)  ;;  %v1994_v2 = vmax.f32 (!%p2420_p10), %v1930_v63, 0.0  ;;  %v2013_v39 = vmax.f32 (!%p2420_p10), %v1949_v36, 0.0 }
 0x2a3   : > { %1902 = vst [vmem:[#allocation2 + $0x1b8] sm:$0xff] %v1838_v8  ;;  %2049 = vst [vmem:[%s3390_s24 + $0x30] sm:$0xff] (!%p2420_p10), %v1985_v48  ;;  %v1995_v3 = vmax.f32 (!%p2420_p10), %v1931_v0, 0.0  ;;  %v1996_v4 = vmax.f32 (!%p2420_p10), %v1932_v1, 0.0  ;;  %v1933_v5 = vld [vmem:[#allocation2 + $0x90] sm:$0xff] (!%p2420_p10)  ;;  %v1934_v6 = vld [vmem:[#allocation2 + $0x98] sm:$0xff] (!%p2420_p10) }
 0x2a4   : > { %v1548_v13 = vpop.f32.mrb[28].mxu0  ;;  %2050 = vst [vmem:[%s3390_s24 + $0x38] sm:$0xff] (!%p2420_p10), %v1986_v49  ;;  %2051 = vst [vmem:[%s3390_s24 + $0x40] sm:$0xff] (!%p2420_p10), %v1987_v50  ;;  %v1935_v7 = vld [vmem:[#allocation2 + $0xa0] sm:$0xff] (!%p2420_p10)  ;;  %v1997_v8 = vmax.f32 (!%p2420_p10), %v1933_v5, 0.0  ;;  %v2014_v40 = vmax.f32 (!%p2420_p10), %v1950_v37, 0.0 }
 0x2a5   : > { %v1774_v14 = vpop.f32.mrb[28].mxu1  ;;  %v1839_v17 = vadd.f32 %v1548_v13, %v363_v9  ;;  %v1550_v19 = vpop.f32.mrb[29].mxu0  ;;  %1914 = sbr.rel (%p2420_p10) target bundleno = 709 (0x2c5), region = 44  ;;  %2052 = vst [vmem:[%s3390_s24 + $0x48] sm:$0xff] (!%p2420_p10), %v1988_v54  ;;  %2053 = vst [vmem:[%s3390_s24 + $0x50] sm:$0xff] (!%p2420_p10), %v1989_v55  ;;  %v1998_v9 = vmax.f32 (!%p2420_p10), %v1934_v6, 0.0 }
 0x2a6   : > { %v1841_v18 = vadd.f32 %v1774_v14, %v365_v10  ;;  %v1776_v20 = vpop.f32.mrb[29].mxu1  ;;  %v1840_v23 = vadd.f32 %v1550_v19, %v364_v11  ;;  %v1552_v25 = vpop.f32.mrb[30].mxu0  ;;  %2054 = vst [vmem:[%s3390_s24 + $0x58] sm:$0xff] (!%p2420_p10), %v1990_v56  ;;  %2055 = vst [vmem:[%s3390_s24 + $0x60] sm:$0xff] (!%p2420_p10), %v1991_v60  ;;  %v1999_v10 = vmax.f32 (!%p2420_p10), %v1935_v7, 0.0  ;;  %v1936_v11 = vld [vmem:[#allocation2 + $0xa8] sm:$0xff] (!%p2420_p10) }
 0x2a7   : > { %v1842_v24 = vadd.f32 %v1776_v20, %v366_v12  ;;  %v1778_v26 = vpop.f32.mrb[30].mxu1  ;;  %1903 = vst [vmem:[#allocation2 + $0x1c0] sm:$0xff] %v1839_v17  ;;  %v1843_v27 = vadd.f32 %v1552_v25, %v367_v15  ;;  %v1554_v29 = vpop.f32.mrb[31].mxu0  ;;  %2056 = vst [vmem:[%s3390_s24 + $0x68] sm:$0xff] (!%p2420_p10), %v1992_v61  ;;  %v1937_v12 = vld [vmem:[#allocation2 + $0xb0] sm:$0xff] (!%p2420_p10)  ;;  %v1938_v13 = vld [vmem:[#allocation2 + $0xb8] sm:$0xff] (!%p2420_p10) }
 0x2a8   : > { %1905 = vst [vmem:[#allocation2 + $0x1d0] sm:$0xff] %v1841_v18  ;;  %v1845_v28 = vadd.f32 %v1778_v26, %v369_v16  ;;  %v1780_v30 = vpop.f32.mrb[31].mxu1  ;;  %1904 = vst [vmem:[#allocation2 + $0x1c8] sm:$0xff] %v1840_v23  ;;  %v1844_v31 = vadd.f32 %v1554_v29, %v368_v21  ;;  %v2000_v14 = vmax.f32 (!%p2420_p10), %v1936_v11, 0.0  ;;  %v2001_v15 = vmax.f32 (!%p2420_p10), %v1937_v12, 0.0  ;;  %v1939_v17 = vld [vmem:[#allocation2 + $0xc0] sm:$0xff] (!%p2420_p10) }
 0x2a9   : > { %1906 = vst [vmem:[#allocation2 + $0x1d8] sm:$0xff] %v1842_v24  ;;  %v1846_v32 = vadd.f32 %v1780_v30, %v370_v22  ;;  %1907 = vst [vmem:[#allocation2 + $0x1e0] sm:$0xff] %v1843_v27  ;;  %v2002_v16 = vmax.f32 (!%p2420_p10), %v1938_v13, 0.0  ;;  %v1940_v18 = vld [vmem:[#allocation2 + $0xc8] sm:$0xff] (!%p2420_p10)  ;;  %v1941_v19 = vld [vmem:[#allocation2 + $0xd0] sm:$0xff] (!%p2420_p10)  ;;  %v2003_v20 = vmax.f32 (!%p2420_p10), %v1939_v17, 0.0 }
 0x2aa   : > { %1909 = vst [vmem:[#allocation2 + $0x1f0] sm:$0xff] %v1845_v28  ;;  %1908 = vst [vmem:[#allocation2 + $0x1e8] sm:$0xff] %v1844_v31  ;;  %v2004_v21 = vmax.f32 (!%p2420_p10), %v1940_v18, 0.0  ;;  %v2005_v22 = vmax.f32 (!%p2420_p10), %v1941_v19, 0.0  ;;  %v1942_v23 = vld [vmem:[#allocation2 + $0xd8] sm:$0xff] (!%p2420_p10)  ;;  %v1943_v24 = vld [vmem:[#allocation2 + $0xe0] sm:$0xff] (!%p2420_p10) }
 0x2ab   : > { %1910 = vst [vmem:[#allocation2 + $0x1f8] sm:$0xff] %v1846_v32  ;;  %2057 = vst [vmem:[%s3390_s24 + $0x70] sm:$0xff] (!%p2420_p10), %v1993_v62  ;;  %v1944_v25 = vld [vmem:[#allocation2 + $0xe8] sm:$0xff] (!%p2420_p10)  ;;  %v2006_v26 = vmax.f32 (!%p2420_p10), %v1942_v23, 0.0  ;;  %v2007_v27 = vmax.f32 (!%p2420_p10), %v1943_v24, 0.0  ;;  %v1945_v29 = vld [vmem:[#allocation2 + $0xf0] sm:$0xff] (!%p2420_p10) }
 0x2ac   : > { %2058 = vst [vmem:[%s3390_s24 + $0x78] sm:$0xff] %v1994_v2  ;;  %2059 = vst [vmem:[%s3390_s24 + $0x80] sm:$0xff] %v1995_v3  ;;  %v2008_v28 = vmax.f32 %v1944_v25, 0.0  ;;  %v1946_v30 = vld [vmem:[#allocation2 + $0xf8] sm:$0xff]  ;;  %v1947_v31 = vld [vmem:[#allocation2 + $0x100] sm:$0xff]  ;;  %v2009_v32 = vmax.f32 %v1945_v29, 0.0 }
 0x2ad   : > { %2060 = vst [vmem:[%s3390_s24 + $0x88] sm:$0xff] %v1996_v4  ;;  %2061 = vst [vmem:[%s3390_s24 + $0x90] sm:$0xff] %v1997_v8  ;;  %v2010_v33 = vmax.f32 %v1946_v30, 0.0  ;;  %v2011_v34 = vmax.f32 %v1947_v31, 0.0  ;;  %v1951_v41 = vld [vmem:[#allocation2 + $0x120] sm:$0xff]  ;;  %v1952_v42 = vld [vmem:[#allocation2 + $0x128] sm:$0xff] }
 0x2ae   : > { %2062 = vst [vmem:[%s3390_s24 + $0x98] sm:$0xff] %v1998_v9  ;;  %2063 = vst [vmem:[%s3390_s24 + $0xa0] sm:$0xff] %v1999_v10  ;;  %v1953_v43 = vld [vmem:[#allocation2 + $0x130] sm:$0xff]  ;;  %v2015_v44 = vmax.f32 %v1951_v41, 0.0  ;;  %v2016_v45 = vmax.f32 %v1952_v42, 0.0  ;;  %v1954_v47 = vld [vmem:[#allocation2 + $0x138] sm:$0xff] }
 0x2af   : > { %2064 = vst [vmem:[%s3390_s24 + $0xa8] sm:$0xff] %v2000_v14  ;;  %2065 = vst [vmem:[%s3390_s24 + $0xb0] sm:$0xff] %v2001_v15  ;;  %v2017_v46 = vmax.f32 %v1953_v43, 0.0  ;;  %v1955_v48 = vld [vmem:[#allocation2 + $0x140] sm:$0xff]  ;;  %v1956_v49 = vld [vmem:[#allocation2 + $0x148] sm:$0xff]  ;;  %v2018_v50 = vmax.f32 %v1954_v47, 0.0 }
 0x2b0   : > { %2066 = vst [vmem:[%s3390_s24 + $0xb8] sm:$0xff] %v2002_v16  ;;  %2067 = vst [vmem:[%s3390_s24 + $0xc0] sm:$0xff] %v2003_v20  ;;  %v2019_v51 = vmax.f32 %v1955_v48, 0.0  ;;  %v2020_v52 = vmax.f32 %v1956_v49, 0.0  ;;  %v1957_v53 = vld [vmem:[#allocation2 + $0x150] sm:$0xff]  ;;  %v1958_v54 = vld [vmem:[#allocation2 + $0x158] sm:$0xff] }
 0x2b1   : > { %2068 = vst [vmem:[%s3390_s24 + $0xc8] sm:$0xff] %v2004_v21  ;;  %2069 = vst [vmem:[%s3390_s24 + $0xd0] sm:$0xff] %v2005_v22  ;;  %v1959_v55 = vld [vmem:[#allocation2 + $0x160] sm:$0xff]  ;;  %v2021_v56 = vmax.f32 %v1957_v53, 0.0  ;;  %v2022_v57 = vmax.f32 %v1958_v54, 0.0  ;;  %v1960_v59 = vld [vmem:[#allocation2 + $0x168] sm:$0xff] }
 0x2b2   : > { %2070 = vst [vmem:[%s3390_s24 + $0xd8] sm:$0xff] %v2006_v26  ;;  %2071 = vst [vmem:[%s3390_s24 + $0xe0] sm:$0xff] %v2007_v27  ;;  %v2023_v58 = vmax.f32 %v1959_v55, 0.0  ;;  %v1961_v60 = vld [vmem:[#allocation2 + $0x170] sm:$0xff]  ;;  %v1962_v61 = vld [vmem:[#allocation2 + $0x178] sm:$0xff]  ;;  %v2024_v62 = vmax.f32 %v1960_v59, 0.0 }
 0x2b3   : > { %2072 = vst [vmem:[%s3390_s24 + $0xe8] sm:$0xff] %v2008_v28  ;;  %2073 = vst [vmem:[%s3390_s24 + $0xf0] sm:$0xff] %v2009_v32  ;;  %v2025_v63 = vmax.f32 %v1961_v60, 0.0  ;;  %v2026_v0 = vmax.f32 %v1962_v61, 0.0  ;;  %v1963_v1 = vld [vmem:[#allocation2 + $0x180] sm:$0xff]  ;;  %v1964_v2 = vld [vmem:[#allocation2 + $0x188] sm:$0xff] }
 0x2b4   : > { %2074 = vst [vmem:[%s3390_s24 + $0xf8] sm:$0xff] %v2010_v33  ;;  %2075 = vst [vmem:[%s3390_s24 + $0x100] sm:$0xff] %v2011_v34  ;;  %v1965_v3 = vld [vmem:[#allocation2 + $0x190] sm:$0xff]  ;;  %v2027_v4 = vmax.f32 %v1963_v1, 0.0  ;;  %v2028_v5 = vmax.f32 %v1964_v2, 0.0  ;;  %v1966_v7 = vld [vmem:[#allocation2 + $0x198] sm:$0xff] }
 0x2b5   : > { %2076 = vst [vmem:[%s3390_s24 + $0x108] sm:$0xff] %v2012_v38  ;;  %2077 = vst [vmem:[%s3390_s24 + $0x110] sm:$0xff] %v2013_v39  ;;  %v2029_v6 = vmax.f32 %v1965_v3, 0.0  ;;  %v1967_v8 = vld [vmem:[#allocation2 + $0x1a0] sm:$0xff]  ;;  %v1968_v9 = vld [vmem:[#allocation2 + $0x1a8] sm:$0xff]  ;;  %v2030_v10 = vmax.f32 %v1966_v7, 0.0 }
 0x2b6   : > { %2078 = vst [vmem:[%s3390_s24 + $0x118] sm:$0xff] %v2014_v40  ;;  %2079 = vst [vmem:[%s3390_s24 + $0x120] sm:$0xff] %v2015_v44  ;;  %v2031_v11 = vmax.f32 %v1967_v8, 0.0  ;;  %v2032_v12 = vmax.f32 %v1968_v9, 0.0  ;;  %v1969_v13 = vld [vmem:[#allocation2 + $0x1b0] sm:$0xff]  ;;  %v1970_v14 = vld [vmem:[#allocation2 + $0x1b8] sm:$0xff] }
 0x2b7   : > { %2080 = vst [vmem:[%s3390_s24 + $0x128] sm:$0xff] %v2016_v45  ;;  %2081 = vst [vmem:[%s3390_s24 + $0x130] sm:$0xff] %v2017_v46  ;;  %v1971_v15 = vld [vmem:[#allocation2 + $0x1c0] sm:$0xff]  ;;  %v2033_v16 = vmax.f32 %v1969_v13, 0.0  ;;  %v2034_v17 = vmax.f32 %v1970_v14, 0.0  ;;  %v1972_v19 = vld [vmem:[#allocation2 + $0x1c8] sm:$0xff] }
 0x2b8   : > { %2082 = vst [vmem:[%s3390_s24 + $0x138] sm:$0xff] %v2018_v50  ;;  %2083 = vst [vmem:[%s3390_s24 + $0x140] sm:$0xff] %v2019_v51  ;;  %v2035_v18 = vmax.f32 %v1971_v15, 0.0  ;;  %v1973_v20 = vld [vmem:[#allocation2 + $0x1d0] sm:$0xff]  ;;  %v1974_v21 = vld [vmem:[#allocation2 + $0x1d8] sm:$0xff]  ;;  %v2036_v22 = vmax.f32 %v1972_v19, 0.0 }
 0x2b9   : > { %2084 = vst [vmem:[%s3390_s24 + $0x148] sm:$0xff] %v2020_v52  ;;  %2085 = vst [vmem:[%s3390_s24 + $0x150] sm:$0xff] %v2021_v56  ;;  %v2037_v23 = vmax.f32 %v1973_v20, 0.0  ;;  %v2038_v24 = vmax.f32 %v1974_v21, 0.0  ;;  %v1975_v25 = vld [vmem:[#allocation2 + $0x1e0] sm:$0xff]  ;;  %v1976_v26 = vld [vmem:[#allocation2 + $0x1e8] sm:$0xff] }
 0x2ba   : > { %2086 = vst [vmem:[%s3390_s24 + $0x158] sm:$0xff] %v2022_v57  ;;  %2087 = vst [vmem:[%s3390_s24 + $0x160] sm:$0xff] %v2023_v58  ;;  %v1977_v27 = vld [vmem:[#allocation2 + $0x1f0] sm:$0xff]  ;;  %v2039_v28 = vmax.f32 %v1975_v25, 0.0  ;;  %v2040_v29 = vmax.f32 %v1976_v26, 0.0  ;;  %v1978_v31 = vld [vmem:[#allocation2 + $0x1f8] sm:$0xff] }
 0x2bb   : > { %2088 = vst [vmem:[%s3390_s24 + $0x168] sm:$0xff] %v2024_v62  ;;  %2089 = vst [vmem:[%s3390_s24 + $0x170] sm:$0xff] %v2025_v63  ;;  %v2041_v30 = vmax.f32 %v1977_v27, 0.0  ;;  %v2042_v32 = vmax.f32 %v1978_v31, 0.0 }
 0x2bc   : > { %2090 = vst [vmem:[%s3390_s24 + $0x178] sm:$0xff] %v2026_v0  ;;  %2091 = vst [vmem:[%s3390_s24 + $0x180] sm:$0xff] %v2027_v4 }
 0x2bd   : > { %2092 = vst [vmem:[%s3390_s24 + $0x188] sm:$0xff] %v2028_v5  ;;  %2093 = vst [vmem:[%s3390_s24 + $0x190] sm:$0xff] %v2029_v6 }
 0x2be   : > { %2094 = vst [vmem:[%s3390_s24 + $0x198] sm:$0xff] %v2030_v10  ;;  %2095 = vst [vmem:[%s3390_s24 + $0x1a0] sm:$0xff] %v2031_v11 }
 0x2bf   : > { %2096 = vst [vmem:[%s3390_s24 + $0x1a8] sm:$0xff] %v2032_v12  ;;  %2097 = vst [vmem:[%s3390_s24 + $0x1b0] sm:$0xff] %v2033_v16 }
 0x2c0   : > { %2098 = vst [vmem:[%s3390_s24 + $0x1b8] sm:$0xff] %v2034_v17  ;;  %2099 = vst [vmem:[%s3390_s24 + $0x1c0] sm:$0xff] %v2035_v18 }
 0x2c1   : > { %2100 = vst [vmem:[%s3390_s24 + $0x1c8] sm:$0xff] %v2036_v22  ;;  %2101 = vst [vmem:[%s3390_s24 + $0x1d0] sm:$0xff] %v2037_v23 }
 0x2c2   : > { %2102 = vst [vmem:[%s3390_s24 + $0x1d8] sm:$0xff] %v2038_v24  ;;  %2103 = vst [vmem:[%s3390_s24 + $0x1e0] sm:$0xff] %v2039_v28 }
 0x2c3   : > { %2104 = vst [vmem:[%s3390_s24 + $0x1e8] sm:$0xff] %v2040_v29  ;;  %2105 = vst [vmem:[%s3390_s24 + $0x1f0] sm:$0xff] %v2041_v30 }
 0x2c4   : > { %2106 = vst [vmem:[%s3390_s24 + $0x1f8] sm:$0xff] %v2042_v32 }
 0x2c5 PF: > { %s2428_s18 = sshll.u32 %s3069_s19, 9  ;;  %s3814_s8 = sld [smem:[#allocation18_spill]] }
 0x2c6   : > { %s2124_s6 = sshll.u32 %s3390_s24, 4  ;;  %s3693_s28 = scalar_lea.sflag [#allocation5], %s230_s5  ;;  %s3689_s6 = int_to_ptr.vmem [resolvable:$true] %s2124_s6 }
 0x2c7   : > { %s2931_s25 = scalar_lea.vmem %s3689_s6, 8192  ;;  %p3815_p6 = scmp.ne.s32.totalorder %s3804_s29, 0 }
 0x2c8   : > { %p2932_p1 = scmp.ne.s32.totalorder %s3689_s6, %s2931_s25  ;;  %s3089_s19 = smov [#allocation8]  }
 0x2c9   : > { %s2935_s23 = sshll.u32 %s3089_s19, 4  ;;  %s2936_s23 = int_to_ptr.vmem [resolvable:$false] %s2935_s23 }
 0x2ca   : > { %p2933_p3 = pnand %p2932_p1, %p3815_p6  ;;  %s2937_s30 = scalar_lea.vmem %s2936_s23, 16384 }
 0x2cb   : > { %s3686_s17 = scalar_lea.hbm %s3814_s8, %s2428_s18  ;;  %p2938_p12 = scmp.lt.s32.totalorder %s3689_s6, %s2936_s23 }
 0x2cc   : > { %p2934_p5 = pneg %p2933_p3  ;;  %p2939_p11 = scmp.lt.s32.totalorder %s2937_s30, %s2931_s25 }
 0x2ce   : > { %p2940_p0 = por %p2939_p11, %p2938_p12 }
 0x2d0   : > { %p2941_p4 = pnand %p2940_p0, %p2934_p5 }
 0x2d2   : > { %2944 = shalt.err (!%p2941_p4)
}
 0x2d3   : > { %s2945_s2 = scalar_lea.hbm %s3686_s17, 8192  ;;  %s2949_s12 = scalar_lea.hbm %s3814_s8, 65536 }
 0x2d4   : > { %p2946_p9 = scmp.ne.s32.totalorder %s3686_s17, %s2945_s2  ;;  %p2950_p7 = scmp.lt.u32.totalorder %s3686_s17, %s3814_s8 }
 0x2d5   : > { %p2951_p8 = scmp.lt.u32.totalorder %s2949_s12, %s2945_s2  ;;  %p2953_p1 = scmp.lt.u32.totalorder %s2945_s2, %s3686_s17 }
 0x2d6   : > { %p2947_p2 = pnand %p2946_p9, %p3815_p6 }
 0x2d7   : > { %p2952_p10 = por %p2951_p8, %p2950_p7 }
 0x2d8   : > { %p2948_p13 = pneg %p2947_p2 }
 0x2d9   : > { %p2954_p3 = por %p2953_p1, %p2952_p10 }
 0x2db   : > { %p2955_p5 = pnand %p2954_p3, %p2948_p13 }
 0x2dd   : > { %2958 = shalt.err (!%p2955_p5)
}
 0x2de   : > { %s3090_s24 = smov 512   ;;  %s3091_s18 = smov 4096  }
 0x2df   : > { %s3092_s3 = smov 32  }
 0x2e0   : > { %2497 = dma.vmem_to_hbm [thread:$0]  (%p3815_p6), %s3689_s6, 8192, %s3686_s17, %s3693_s28, %s3090_s24, %s3091_s18, %s3092_s3  }
 0x2e1 PF: > { %p2511_p12 = scmp.ge.s32.totalorder %s3081_s22, 2  ;;  %s2139_s4 = sand.u32 1, %s3029_s9  }
 0x2e2   : > { %p3816_p11 = scmp.ne.s32.totalorder %s3806_s27, 0  ;;  %s2140_s25 = scalar_lea.sflag [#allocation5], %s2139_s4 }
 0x2e4   : > { %p2507_p0 = pnand %p2511_p12, %p3816_p11 }
 0x2e6   : > { %3024 = dma.done.wait (!%p2507_p0), %s2140_s25, 8192  }
 0x2e7   : > { %3026 = vsyncadd (!%p2507_p0), %s2140_s25, 4294959104  ;;  %s21_s22 = sadd.s32 1, %s3081_s22   ;;  %s3818_s29 = sld [smem:[#allocation16_spill]] }
 0x2e8   : > { %p3722_p4 = scmp.ge.s32.totalorder %s21_s22, 66   ;;  %s3819_s17 = sld [smem:[#allocation12_spill]] }
 0x2e9   : > { %s3820_s6 = sld [smem:[#allocation14_spill]]  ;;  %s3821_s27 = sld [smem:[#allocation13_spill]] }
 0x2ea   : > { %s3822_s28 = sld [smem:[#allocation15_spill]]  ;;  %s3824_s9 = smov %s3033_s10 }
 0x2eb   : > { %s3825_s10 = smov %s3037_s11  ;;  %s3826_s11 = smov %s3313_s26 }
 0x2ec   : > { %s3827_s12 = smov %s3045_s13  ;;  %s3828_s13 = smov %s3049_s14 }
 0x2ed   : > { %s3829_s14 = smov %s3818_s29  ;;  %s3830_s15 = smov %s3057_s16 }
 0x2ee   : > { %s3831_s16 = smov %s3819_s17  ;;  %s3833_s18 = smov %s3073_s20 }
 0x2ef   : > { %s3832_s17 = smov %s3820_s6  ;;  %s3834_s19 = smov %s3077_s21 }
 0x2f0   : > { %s3835_s20 = smov %s3821_s27  ;;  %s3836_s21 = smov %s3822_s28 }
 0x2f1   :  { %20 = sbr.rel (!%p3722_p4) target bundleno = 15 (0xf), region = 94 }
 0x2f8   :  { %2145 = vsyncpa [#allocation4], 1 }
 0x2f9   :  { %2147 = vsyncpa [#allocation4 + $0x1], 1 }
 0x2fa   :  { %2148 = vsyncpa [#allocation7], 1 }
 0x2fb   :  { %2150 = vsyncpa [#allocation7 + $0x1], 1 }
 0x2fc   :  { %2151 = vsyncpa [#allocation5], 1 }
 0x2fd   :  { %2153 = vsyncpa [#allocation5 + $0x1], 1 }

</bundles_post_ra>
